<compile_context>
chip_gen: v6e
topology: v6e:2x2x1
jax: 0.10.0
libtpu: 0.0.40
codegen_flags: <defaults>
</compile_context>

<pallas_src>
import numpy as np

import jax
import jax.numpy as jnp
from jax.experimental import pallas as pl
from jax.experimental.pallas import tpu as pltpu


# -----------------------------------------------------------------------------
# Compile-time (numpy) helpers: bilinear matrix, Kron upsample, shift matrices.
# -----------------------------------------------------------------------------
def _bilinear_matrix_np(out_size, in_size):
    """Row-stochastic bilinear interpolation matrix, align_corners=True."""
    if out_size == 1:
        src = np.zeros((1,), np.float64)
    else:
        src = np.arange(out_size, dtype=np.float64) * ((in_size - 1) / (out_size - 1))
    i0 = np.clip(np.floor(src), 0, in_size - 1).astype(np.int64)
    i1 = np.minimum(i0 + 1, in_size - 1)
    frac = src - i0
    m = np.zeros((out_size, in_size), np.float64)
    rows = np.arange(out_size)
    m[rows, i0] += 1.0 - frac
    m[rows, i1] += frac
    return m


def _shift_matrix_np(ho_n, wo_n, dh, dw):
    """S[src, dst] = 1 iff shifted[dst] reads phase[dst_ho+dh, dst_wo+dw]=src (valid)."""
    s = ho_n * wo_n
    m = np.zeros((s, s), np.float32)
    for dst in range(s):
        ho, wo = divmod(dst, wo_n)
        sh, sw = ho + dh, wo + dw
        if sh >= 0 and sw >= 0:
            m[sh * wo_n + sw, dst] = 1.0
    return m


# -----------------------------------------------------------------------------
# Fused Stage02Fuse kernel (one grid step == one image, both outputs)
# -----------------------------------------------------------------------------
def _stage02_kernel(xm_ref, xh_ref, xph_ref, w1_ref, sh1_ref, b_ref,
                    w2_ref, sh2_ref, smat_ref, oh_ref, om_ref):
    f32, bf16 = jnp.float32, jnp.bfloat16

    xm = xm_ref[...]                                            # (Cm, Sm) f32

    # ---------------- high path: 1x1 conv -> Kron upsample -> +res -> ReLU ----
    z = jnp.dot(w1_ref[...], xm.astype(bf16),
                preferred_element_type=f32)                     # (Ch, Sm)
    up = jnp.dot(z.astype(bf16), b_ref[...],
                 preferred_element_type=f32)                    # (Ch, Sh) lane-dense
    oh = up + sh1_ref[...] + xh_ref[...]                        # BN shift + residual
    oh_ref[...] = jnp.maximum(oh, 0.0).astype(oh_ref.dtype)

    # ---------------- medium path: 3x3/s2 conv as 9 in-kernel taps ------------
    acc = xm + sh2_ref[...]                                     # residual + BN shift
    for kh in range(3):
        for kw in range(3):
            pa = 0 if kh == 1 else 1          # row parity of the source phase
            pb = 0 if kw == 1 else 1          # col parity of the source phase
            xp = xph_ref[2 * pa + pb]                           # (Ch, Sm) f32
            u = jnp.dot(w2_ref[kh * 3 + kw], xp.astype(bf16),
                        preferred_element_type=f32)             # (Cm, Sm)
            need_dh = kh == 0                 # needs -1 row shift (top pad)
            need_dw = kw == 0                 # needs -1 col shift (left pad)
            if need_dh or need_dw:
                si = 0 if (need_dh and need_dw) else (1 if need_dh else 2)
                # exact 0/1 shift matrix; also zero-fills padded border
                u = jnp.dot(u, smat_ref[si], preferred_element_type=f32)
            acc = acc + u
    om_ref[...] = jnp.maximum(acc, 0.0).astype(om_ref.dtype)


# -----------------------------------------------------------------------------
# Stage02Fuse forward
# -----------------------------------------------------------------------------
@jax.jit
def stage02_fuse(params, x_high, x_medium):
    N, C_h, H, W = x_high.shape              # (N, 48, H, W)
    _, C_m, Hm, Wm = x_medium.shape          # (N, 96, H/2, W/2)
    assert H == W, "F.interpolate(size=(W,H)) quirk: only square inputs are supported"
    assert (Hm, Wm) == (H // 2, W // 2)
    Sh = H * W
    Sm = Hm * Wm

    # ---- compile-time constants (shape-derived, built in numpy) ----
    a_row = _bilinear_matrix_np(W, Hm)       # output height = W  (quirk)
    a_col = _bilinear_matrix_np(H, Wm)       # output width  = H
    kron_b = np.kron(a_row, a_col).T.astype(np.float32)        # (Sm, Sh)
    smats = np.stack([_shift_matrix_np(Hm, Wm, -1, -1),
                      _shift_matrix_np(Hm, Wm, -1, 0),
                      _shift_matrix_np(Hm, Wm, 0, -1)]).astype(np.float32)
    b_op = jnp.asarray(kron_b, jnp.bfloat16)
    smats_op = jnp.asarray(smats, jnp.float32)

    # ---- layout glue: free reshapes + one small stride-2 phase split ----
    xm = x_medium.reshape(N, C_m, Sm)
    xh = x_high.reshape(N, C_h, Sh)
    xph = jnp.transpose(x_high.reshape(N, C_h, Hm, 2, Wm, 2),
                        (0, 3, 5, 1, 2, 4)).reshape(N, 4, C_h, Sm)

    flops = N * (2 * C_h * C_m * Sm + 2 * C_h * Sm * Sh
                 + 9 * 2 * C_m * C_h * Sm + 5 * 2 * C_m * Sm * Sm)
    bytes_accessed = (xm.size * 4 + xh.size * 4 + xph.size * 4
                      + b_op.size * 2 + smats_op.size * 4
                      + params["w_m2h"].size * 2 + params["w_h2m"].size * 2
                      + params["sh_m2h"].size * 4 + params["sh_h2m"].size * 4
                      + (N * C_h * Sh + N * C_m * Sm) * 4)

    out_high, out_med = pl.pallas_call(
        _stage02_kernel,
        out_shape=(jax.ShapeDtypeStruct((N, C_h, Sh), x_high.dtype),
                   jax.ShapeDtypeStruct((N, C_m, Sm), x_medium.dtype)),
        grid=(N,),
        in_specs=[
            pl.BlockSpec((None, C_m, Sm), lambda n: (n, 0, 0)),        # x_medium
            pl.BlockSpec((None, C_h, Sh), lambda n: (n, 0, 0)),        # x_high residual
            pl.BlockSpec((None, 4, C_h, Sm), lambda n: (n, 0, 0, 0)),  # x_high phases
            pl.BlockSpec((C_h, C_m), lambda n: (0, 0)),                # w_m2h (bf16)
            pl.BlockSpec((C_h, 1), lambda n: (0, 0)),                  # BN shift m2h
            pl.BlockSpec((Sm, Sh), lambda n: (0, 0)),                  # Kron upsample
            pl.BlockSpec((9, C_m, C_h), lambda n: (0, 0, 0)),          # w_h2m taps (bf16)
            pl.BlockSpec((C_m, 1), lambda n: (0, 0)),                  # BN shift h2m
            pl.BlockSpec((3, Sm, Sm), lambda n: (0, 0, 0)),            # shift matrices
        ],
        out_specs=(
            pl.BlockSpec((None, C_h, Sh), lambda n: (n, 0, 0)),
            pl.BlockSpec((None, C_m, Sm), lambda n: (n, 0, 0)),
        ),
        compiler_params=pltpu.CompilerParams(dimension_semantics=("parallel",)),
        cost_estimate=pl.CostEstimate(flops=flops, transcendentals=0,
                                      bytes_accessed=bytes_accessed),
    )(xm, xh, xph, params["w_m2h"], params["sh_m2h"], b_op,
      params["w_h2m"], params["sh_h2m"], smats_op)

    return (out_high.reshape(N, C_h, H, W),
            out_med.reshape(N, C_m, Hm, Wm))


# -----------------------------------------------------------------------------
# Deterministic parameter init (synthetic; shapes from the module __init__).
# BN scale is pre-folded into bf16 weights; BN shift kept in f32.
# -----------------------------------------------------------------------------
def init_params(key):
    ks = jax.random.split(key, 10)
    eps = 1e-5

    # medium_to_high: Conv2d(96, 48, k=1, bias=False) + BatchNorm2d(48)
    w_m2h_pt = 0.05 * jax.random.normal(ks[0], (48, 96, 1, 1), jnp.float32)
    g1 = 1.0 + 0.1 * jax.random.normal(ks[1], (48,), jnp.float32)
    b1 = 0.05 * jax.random.normal(ks[2], (48,), jnp.float32)
    mu1 = 0.1 * jax.random.normal(ks[3], (48,), jnp.float32)
    var1 = 1.0 + 0.1 * jnp.abs(jax.random.normal(ks[4], (48,), jnp.float32))
    s1 = g1 / jnp.sqrt(var1 + eps)
    w1 = (w_m2h_pt[:, :, 0, 0] * s1[:, None]).astype(jnp.bfloat16)     # (48, 96)
    sh1 = (b1 - mu1 * s1).reshape(48, 1)

    # high_to_medium: Conv2d(48, 96, k=3, s=2, p=1, bias=False) + BatchNorm2d(96)
    w_h2m_pt = 0.05 * jax.random.normal(ks[5], (96, 48, 3, 3), jnp.float32)
    g2 = 1.0 + 0.1 * jax.random.normal(ks[6], (96,), jnp.float32)
    b2 = 0.05 * jax.random.normal(ks[7], (96,), jnp.float32)
    mu2 = 0.1 * jax.random.normal(ks[8], (96,), jnp.float32)
    var2 = 1.0 + 0.1 * jnp.abs(jax.random.normal(ks[9], (96,), jnp.float32))
    s2 = g2 / jnp.sqrt(var2 + eps)
    # tap-major (9, 96, 48) with k = kh*3 + kw, BN scale folded per out-channel
    w2 = (jnp.transpose(w_h2m_pt, (2, 3, 0, 1)).reshape(9, 96, 48)
          * s2[None, :, None]).astype(jnp.bfloat16)
    sh2 = (b2 - mu2 * s2).reshape(96, 1)

    return {"w_m2h": w1, "sh_m2h": sh1, "w_h2m": w2, "sh_h2m": sh2}


if __name__ == "__main__":
    key = jax.random.PRNGKey(0)
    k_p, k_h, k_m = jax.random.split(key, 3)

    params = init_params(k_p)

    # HRNet stage-2: high branch (48 ch, HxW), medium branch (96 ch, H/2 x W/2)
    N, H, W = 2, 16, 16
    x_high = jax.random.normal(k_h, (N, 48, H, W), jnp.float32)
    x_medium = jax.random.normal(k_m, (N, 96, H // 2, W // 2), jnp.float32)

    out_high, out_med = stage02_fuse(params, x_high, x_medium)
    out_high = jax.block_until_ready(out_high)
    out_med = jax.block_until_ready(out_med)

    assert out_high.shape == (N, 48, H, W)
    assert out_med.shape == (N, 96, H // 2, W // 2)
    assert bool(jnp.all(out_high >= 0)) and bool(jnp.all(out_med >= 0))
    print("KERNEL_OK")
</pallas_src>

<mosaic_0001>
module attributes {stable_mosaic.version = 11 : i64} {
  func.func @_stage02_kernel(%arg0: i32, %arg1: memref<1x96x64xf32, #tpu.memory_space<vmem>>, %arg2: memref<1x48x256xf32, #tpu.memory_space<vmem>>, %arg3: memref<1x4x48x64xf32, #tpu.memory_space<vmem>>, %arg4: memref<48x96xbf16, #tpu.memory_space<vmem>>, %arg5: memref<48x1xf32, #tpu.memory_space<vmem>>, %arg6: memref<64x256xbf16, #tpu.memory_space<vmem>>, %arg7: memref<9x96x48xbf16, #tpu.memory_space<vmem>>, %arg8: memref<96x1xf32, #tpu.memory_space<vmem>>, %arg9: memref<3x64x64xf32, #tpu.memory_space<vmem>>, %arg10: memref<1x48x256xf32, #tpu.memory_space<vmem>>, %arg11: memref<1x96x64xf32, #tpu.memory_space<vmem>>) attributes {dimension_semantics = [#tpu.dimension_semantics<parallel>], iteration_bounds = array<i64: 2>, scalar_prefetch = 0 : i64, scratch_operands = 0 : i64, tpu.core_type = #tpu.core_type<tc>, window_params = [{transform_indices = @transform_0, window_bounds = array<i64: 1, 96, 64>}, {transform_indices = @transform_1, window_bounds = array<i64: 1, 48, 256>}, {transform_indices = @transform_2, window_bounds = array<i64: 1, 4, 48, 64>}, {pipeline_mode = #tpu.pipeline_mode<synchronous>, transform_indices = @transform_3, window_bounds = array<i64: 48, 96>}, {pipeline_mode = #tpu.pipeline_mode<synchronous>, transform_indices = @transform_4, window_bounds = array<i64: 48, 1>}, {pipeline_mode = #tpu.pipeline_mode<synchronous>, transform_indices = @transform_5, window_bounds = array<i64: 64, 256>}, {pipeline_mode = #tpu.pipeline_mode<synchronous>, transform_indices = @transform_6, window_bounds = array<i64: 9, 96, 48>}, {pipeline_mode = #tpu.pipeline_mode<synchronous>, transform_indices = @transform_7, window_bounds = array<i64: 96, 1>}, {pipeline_mode = #tpu.pipeline_mode<synchronous>, transform_indices = @transform_8, window_bounds = array<i64: 3, 64, 64>}, {transform_indices = @transform_9, window_bounds = array<i64: 1, 48, 256>}, {transform_indices = @transform_10, window_bounds = array<i64: 1, 96, 64>}]} {
    %c0 = arith.constant 0 : index
    %c0_0 = arith.constant 0 : index
    %c0_1 = arith.constant 0 : index
    %0 = vector.load %arg1[%c0, %c0_0, %c0_1] : memref<1x96x64xf32, #tpu.memory_space<vmem>>, vector<1x96x64xf32>
    %1 = vector.shape_cast %0 : vector<1x96x64xf32> to vector<96x64xf32>
    %c0_2 = arith.constant 0 : index
    %c0_3 = arith.constant 0 : index
    %2 = vector.load %arg4[%c0_2, %c0_3] : memref<48x96xbf16, #tpu.memory_space<vmem>>, vector<48x96xbf16>
    %3 = arith.truncf %1 : vector<96x64xf32> to vector<96x64xbf16>
    %cst = arith.constant dense<0.000000e+00> : vector<48x64xf32>
    %4 = tpu.matmul %2, %3, %cst {dimension_numbers = #tpu.dot_dimension_numbers<[1], [0], [0], [1], [0, 0, 1, 1], [], []>} : vector<48x96xbf16>, vector<96x64xbf16>, vector<48x64xf32> -> vector<48x64xf32>
    %5 = arith.truncf %4 : vector<48x64xf32> to vector<48x64xbf16>
    %c0_4 = arith.constant 0 : index
    %c0_5 = arith.constant 0 : index
    %6 = vector.load %arg6[%c0_4, %c0_5] : memref<64x256xbf16, #tpu.memory_space<vmem>>, vector<64x256xbf16>
    %cst_6 = arith.constant dense<0.000000e+00> : vector<48x256xf32>
    %7 = tpu.matmul %5, %6, %cst_6 {dimension_numbers = #tpu.dot_dimension_numbers<[1], [0], [0], [1], [0, 0, 1, 1], [], []>} : vector<48x64xbf16>, vector<64x256xbf16>, vector<48x256xf32> -> vector<48x256xf32>
    %c0_7 = arith.constant 0 : index
    %c0_8 = arith.constant 0 : index
    %8 = vector.load %arg5[%c0_7, %c0_8] : memref<48x1xf32, #tpu.memory_space<vmem>>, vector<48x1xf32>
    %9 = vector.broadcast %8 : vector<48x1xf32> to vector<48x256xf32>
    %10 = arith.addf %7, %9 : vector<48x256xf32>
    %c0_9 = arith.constant 0 : index
    %c0_10 = arith.constant 0 : index
    %c0_11 = arith.constant 0 : index
    %11 = vector.load %arg2[%c0_9, %c0_10, %c0_11] : memref<1x48x256xf32, #tpu.memory_space<vmem>>, vector<1x48x256xf32>
    %12 = vector.shape_cast %11 : vector<1x48x256xf32> to vector<48x256xf32>
    %13 = arith.addf %10, %12 : vector<48x256xf32>
    %cst_12 = arith.constant 0.000000e+00 : f32
    %14 = vector.broadcast %cst_12 : f32 to vector<48x256xf32>
    %15 = arith.maximumf %13, %14 : vector<48x256xf32>
    %c0_13 = arith.constant 0 : index
    %c0_14 = arith.constant 0 : index
    %c0_15 = arith.constant 0 : index
    %16 = vector.load %arg10[%c0_13, %c0_14, %c0_15] : memref<1x48x256xf32, #tpu.memory_space<vmem>>, vector<1x48x256xf32>
    %17 = vector.shape_cast %16 : vector<1x48x256xf32> to vector<48x256xf32>
    %18 = vector.shape_cast %15 : vector<48x256xf32> to vector<1x48x256xf32>
    tpu.vector_store %arg10[%c0_13, %c0_14, %c0_15], %18 {strides = array<i32>} : memref<1x48x256xf32, #tpu.memory_space<vmem>>, vector<1x48x256xf32>,
    %c0_16 = arith.constant 0 : index
    %c0_17 = arith.constant 0 : index
    %19 = vector.load %arg8[%c0_16, %c0_17] : memref<96x1xf32, #tpu.memory_space<vmem>>, vector<96x1xf32>
    %20 = vector.broadcast %19 : vector<96x1xf32> to vector<96x64xf32>
    %21 = arith.addf %1, %20 : vector<96x64xf32>
    %c0_18 = arith.constant 0 : index
    %c3 = arith.constant 3 : index
    %c0_19 = arith.constant 0 : index
    %c0_20 = arith.constant 0 : index
    %22 = vector.load %arg3[%c0_18, %c3, %c0_19, %c0_20] : memref<1x4x48x64xf32, #tpu.memory_space<vmem>>, vector<1x1x48x64xf32>
    %23 = vector.shape_cast %22 : vector<1x1x48x64xf32> to vector<48x64xf32>
    %c0_21 = arith.constant 0 : index
    %c0_22 = arith.constant 0 : index
    %c0_23 = arith.constant 0 : index
    %24 = vector.load %arg7[%c0_21, %c0_22, %c0_23] : memref<9x96x48xbf16, #tpu.memory_space<vmem>>, vector<1x96x48xbf16>
    %25 = vector.shape_cast %24 : vector<1x96x48xbf16> to vector<96x48xbf16>
    %26 = arith.truncf %23 : vector<48x64xf32> to vector<48x64xbf16>
    %cst_24 = arith.constant dense<0.000000e+00> : vector<96x64xf32>
    %27 = tpu.matmul %25, %26, %cst_24 {dimension_numbers = #tpu.dot_dimension_numbers<[1], [0], [0], [1], [0, 0, 1, 1], [], []>} : vector<96x48xbf16>, vector<48x64xbf16>, vector<96x64xf32> -> vector<96x64xf32>
    %c0_25 = arith.constant 0 : index
    %c0_26 = arith.constant 0 : index
    %c0_27 = arith.constant 0 : index
    %28 = vector.load %arg9[%c0_25, %c0_26, %c0_27] : memref<3x64x64xf32, #tpu.memory_space<vmem>>, vector<1x64x64xf32>
    %29 = vector.shape_cast %28 : vector<1x64x64xf32> to vector<64x64xf32>
    %cst_28 = arith.constant dense<0.000000e+00> : vector<96x64xf32>
    %30 = tpu.matmul %27, %29, %cst_28 {dimension_numbers = #tpu.dot_dimension_numbers<[1], [0], [0], [1], [0, 0, 1, 1], [], []>} : vector<96x64xf32>, vector<64x64xf32>, vector<96x64xf32> -> vector<96x64xf32>
    %31 = arith.addf %21, %30 : vector<96x64xf32>
    %c0_29 = arith.constant 0 : index
    %c2 = arith.constant 2 : index
    %c0_30 = arith.constant 0 : index
    %c0_31 = arith.constant 0 : index
    %32 = vector.load %arg3[%c0_29, %c2, %c0_30, %c0_31] : memref<1x4x48x64xf32, #tpu.memory_space<vmem>>, vector<1x1x48x64xf32>
    %33 = vector.shape_cast %32 : vector<1x1x48x64xf32> to vector<48x64xf32>
    %c1 = arith.constant 1 : index
    %c0_32 = arith.constant 0 : index
    %c0_33 = arith.constant 0 : index
    %34 = vector.load %arg7[%c1, %c0_32, %c0_33] : memref<9x96x48xbf16, #tpu.memory_space<vmem>>, vector<1x96x48xbf16>
    %35 = vector.shape_cast %34 : vector<1x96x48xbf16> to vector<96x48xbf16>
    %36 = arith.truncf %33 : vector<48x64xf32> to vector<48x64xbf16>
    %cst_34 = arith.constant dense<0.000000e+00> : vector<96x64xf32>
    %37 = tpu.matmul %35, %36, %cst_34 {dimension_numbers = #tpu.dot_dimension_numbers<[1], [0], [0], [1], [0, 0, 1, 1], [], []>} : vector<96x48xbf16>, vector<48x64xbf16>, vector<96x64xf32> -> vector<96x64xf32>
    %c1_35 = arith.constant 1 : index
    %c0_36 = arith.constant 0 : index
    %c0_37 = arith.constant 0 : index
    %38 = vector.load %arg9[%c1_35, %c0_36, %c0_37] : memref<3x64x64xf32, #tpu.memory_space<vmem>>, vector<1x64x64xf32>
    %39 = vector.shape_cast %38 : vector<1x64x64xf32> to vector<64x64xf32>
    %cst_38 = arith.constant dense<0.000000e+00> : vector<96x64xf32>
    %40 = tpu.matmul %37, %39, %cst_38 {dimension_numbers = #tpu.dot_dimension_numbers<[1], [0], [0], [1], [0, 0, 1, 1], [], []>} : vector<96x64xf32>, vector<64x64xf32>, vector<96x64xf32> -> vector<96x64xf32>
    %41 = arith.addf %31, %40 : vector<96x64xf32>
    %c0_39 = arith.constant 0 : index
    %c3_40 = arith.constant 3 : index
    %c0_41 = arith.constant 0 : index
    %c0_42 = arith.constant 0 : index
    %42 = vector.load %arg3[%c0_39, %c3_40, %c0_41, %c0_42] : memref<1x4x48x64xf32, #tpu.memory_space<vmem>>, vector<1x1x48x64xf32>
    %43 = vector.shape_cast %42 : vector<1x1x48x64xf32> to vector<48x64xf32>
    %c2_43 = arith.constant 2 : index
    %c0_44 = arith.constant 0 : index
    %c0_45 = arith.constant 0 : index
    %44 = vector.load %arg7[%c2_43, %c0_44, %c0_45] : memref<9x96x48xbf16, #tpu.memory_space<vmem>>, vector<1x96x48xbf16>
    %45 = vector.shape_cast %44 : vector<1x96x48xbf16> to vector<96x48xbf16>
    %46 = arith.truncf %43 : vector<48x64xf32> to vector<48x64xbf16>
    %cst_46 = arith.constant dense<0.000000e+00> : vector<96x64xf32>
    %47 = tpu.matmul %45, %46, %cst_46 {dimension_numbers = #tpu.dot_dimension_numbers<[1], [0], [0], [1], [0, 0, 1, 1], [], []>} : vector<96x48xbf16>, vector<48x64xbf16>, vector<96x64xf32> -> vector<96x64xf32>
    %c1_47 = arith.constant 1 : index
    %c0_48 = arith.constant 0 : index
    %c0_49 = arith.constant 0 : index
    %48 = vector.load %arg9[%c1_47, %c0_48, %c0_49] : memref<3x64x64xf32, #tpu.memory_space<vmem>>, vector<1x64x64xf32>
    %49 = vector.shape_cast %48 : vector<1x64x64xf32> to vector<64x64xf32>
    %cst_50 = arith.constant dense<0.000000e+00> : vector<96x64xf32>
    %50 = tpu.matmul %47, %49, %cst_50 {dimension_numbers = #tpu.dot_dimension_numbers<[1], [0], [0], [1], [0, 0, 1, 1], [], []>} : vector<96x64xf32>, vector<64x64xf32>, vector<96x64xf32> -> vector<96x64xf32>
    %51 = arith.addf %41, %50 : vector<96x64xf32>
    %c0_51 = arith.constant 0 : index
    %c1_52 = arith.constant 1 : index
    %c0_53 = arith.constant 0 : index
    %c0_54 = arith.constant 0 : index
    %52 = vector.load %arg3[%c0_51, %c1_52, %c0_53, %c0_54] : memref<1x4x48x64xf32, #tpu.memory_space<vmem>>, vector<1x1x48x64xf32>
    %53 = vector.shape_cast %52 : vector<1x1x48x64xf32> to vector<48x64xf32>
    %c3_55 = arith.constant 3 : index
    %c0_56 = arith.constant 0 : index
    %c0_57 = arith.constant 0 : index
    %54 = vector.load %arg7[%c3_55, %c0_56, %c0_57] : memref<9x96x48xbf16, #tpu.memory_space<vmem>>, vector<1x96x48xbf16>
    %55 = vector.shape_cast %54 : vector<1x96x48xbf16> to vector<96x48xbf16>
    %56 = arith.truncf %53 : vector<48x64xf32> to vector<48x64xbf16>
    %cst_58 = arith.constant dense<0.000000e+00> : vector<96x64xf32>
    %57 = tpu.matmul %55, %56, %cst_58 {dimension_numbers = #tpu.dot_dimension_numbers<[1], [0], [0], [1], [0, 0, 1, 1], [], []>} : vector<96x48xbf16>, vector<48x64xbf16>, vector<96x64xf32> -> vector<96x64xf32>
    %c2_59 = arith.constant 2 : index
    %c0_60 = arith.constant 0 : index
    %c0_61 = arith.constant 0 : index
    %58 = vector.load %arg9[%c2_59, %c0_60, %c0_61] : memref<3x64x64xf32, #tpu.memory_space<vmem>>, vector<1x64x64xf32>
    %59 = vector.shape_cast %58 : vector<1x64x64xf32> to vector<64x64xf32>
    %cst_62 = arith.constant dense<0.000000e+00> : vector<96x64xf32>
    %60 = tpu.matmul %57, %59, %cst_62 {dimension_numbers = #tpu.dot_dimension_numbers<[1], [0], [0], [1], [0, 0, 1, 1], [], []>} : vector<96x64xf32>, vector<64x64xf32>, vector<96x64xf32> -> vector<96x64xf32>
    %61 = arith.addf %51, %60 : vector<96x64xf32>
    %c0_63 = arith.constant 0 : index
    %c0_64 = arith.constant 0 : index
    %c0_65 = arith.constant 0 : index
    %c0_66 = arith.constant 0 : index
    %62 = vector.load %arg3[%c0_63, %c0_64, %c0_65, %c0_66] : memref<1x4x48x64xf32, #tpu.memory_space<vmem>>, vector<1x1x48x64xf32>
    %63 = vector.shape_cast %62 : vector<1x1x48x64xf32> to vector<48x64xf32>
    %c4 = arith.constant 4 : index
    %c0_67 = arith.constant 0 : index
    %c0_68 = arith.constant 0 : index
    %64 = vector.load %arg7[%c4, %c0_67, %c0_68] : memref<9x96x48xbf16, #tpu.memory_space<vmem>>, vector<1x96x48xbf16>
    %65 = vector.shape_cast %64 : vector<1x96x48xbf16> to vector<96x48xbf16>
    %66 = arith.truncf %63 : vector<48x64xf32> to vector<48x64xbf16>
    %cst_69 = arith.constant dense<0.000000e+00> : vector<96x64xf32>
    %67 = tpu.matmul %65, %66, %cst_69 {dimension_numbers = #tpu.dot_dimension_numbers<[1], [0], [0], [1], [0, 0, 1, 1], [], []>} : vector<96x48xbf16>, vector<48x64xbf16>, vector<96x64xf32> -> vector<96x64xf32>
    %68 = arith.addf %61, %67 : vector<96x64xf32>
    %c0_70 = arith.constant 0 : index
    %c1_71 = arith.constant 1 : index
    %c0_72 = arith.constant 0 : index
    %c0_73 = arith.constant 0 : index
    %69 = vector.load %arg3[%c0_70, %c1_71, %c0_72, %c0_73] : memref<1x4x48x64xf32, #tpu.memory_space<vmem>>, vector<1x1x48x64xf32>
    %70 = vector.shape_cast %69 : vector<1x1x48x64xf32> to vector<48x64xf32>
    %c5 = arith.constant 5 : index
    %c0_74 = arith.constant 0 : index
    %c0_75 = arith.constant 0 : index
    %71 = vector.load %arg7[%c5, %c0_74, %c0_75] : memref<9x96x48xbf16, #tpu.memory_space<vmem>>, vector<1x96x48xbf16>
    %72 = vector.shape_cast %71 : vector<1x96x48xbf16> to vector<96x48xbf16>
    %73 = arith.truncf %70 : vector<48x64xf32> to vector<48x64xbf16>
    %cst_76 = arith.constant dense<0.000000e+00> : vector<96x64xf32>
    %74 = tpu.matmul %72, %73, %cst_76 {dimension_numbers = #tpu.dot_dimension_numbers<[1], [0], [0], [1], [0, 0, 1, 1], [], []>} : vector<96x48xbf16>, vector<48x64xbf16>, vector<96x64xf32> -> vector<96x64xf32>
    %75 = arith.addf %68, %74 : vector<96x64xf32>
    %c0_77 = arith.constant 0 : index
    %c3_78 = arith.constant 3 : index
    %c0_79 = arith.constant 0 : index
    %c0_80 = arith.constant 0 : index
    %76 = vector.load %arg3[%c0_77, %c3_78, %c0_79, %c0_80] : memref<1x4x48x64xf32, #tpu.memory_space<vmem>>, vector<1x1x48x64xf32>
    %77 = vector.shape_cast %76 : vector<1x1x48x64xf32> to vector<48x64xf32>
    %c6 = arith.constant 6 : index
    %c0_81 = arith.constant 0 : index
    %c0_82 = arith.constant 0 : index
    %78 = vector.load %arg7[%c6, %c0_81, %c0_82] : memref<9x96x48xbf16, #tpu.memory_space<vmem>>, vector<1x96x48xbf16>
    %79 = vector.shape_cast %78 : vector<1x96x48xbf16> to vector<96x48xbf16>
    %80 = arith.truncf %77 : vector<48x64xf32> to vector<48x64xbf16>
    %cst_83 = arith.constant dense<0.000000e+00> : vector<96x64xf32>
    %81 = tpu.matmul %79, %80, %cst_83 {dimension_numbers = #tpu.dot_dimension_numbers<[1], [0], [0], [1], [0, 0, 1, 1], [], []>} : vector<96x48xbf16>, vector<48x64xbf16>, vector<96x64xf32> -> vector<96x64xf32>
    %c2_84 = arith.constant 2 : index
    %c0_85 = arith.constant 0 : index
    %c0_86 = arith.constant 0 : index
    %82 = vector.load %arg9[%c2_84, %c0_85, %c0_86] : memref<3x64x64xf32, #tpu.memory_space<vmem>>, vector<1x64x64xf32>
    %83 = vector.shape_cast %82 : vector<1x64x64xf32> to vector<64x64xf32>
    %cst_87 = arith.constant dense<0.000000e+00> : vector<96x64xf32>
    %84 = tpu.matmul %81, %83, %cst_87 {dimension_numbers = #tpu.dot_dimension_numbers<[1], [0], [0], [1], [0, 0, 1, 1], [], []>} : vector<96x64xf32>, vector<64x64xf32>, vector<96x64xf32> -> vector<96x64xf32>
    %85 = arith.addf %75, %84 : vector<96x64xf32>
    %c0_88 = arith.constant 0 : index
    %c2_89 = arith.constant 2 : index
    %c0_90 = arith.constant 0 : index
    %c0_91 = arith.constant 0 : index
    %86 = vector.load %arg3[%c0_88, %c2_89, %c0_90, %c0_91] : memref<1x4x48x64xf32, #tpu.memory_space<vmem>>, vector<1x1x48x64xf32>
    %87 = vector.shape_cast %86 : vector<1x1x48x64xf32> to vector<48x64xf32>
    %c7 = arith.constant 7 : index
    %c0_92 = arith.constant 0 : index
    %c0_93 = arith.constant 0 : index
    %88 = vector.load %arg7[%c7, %c0_92, %c0_93] : memref<9x96x48xbf16, #tpu.memory_space<vmem>>, vector<1x96x48xbf16>
    %89 = vector.shape_cast %88 : vector<1x96x48xbf16> to vector<96x48xbf16>
    %90 = arith.truncf %87 : vector<48x64xf32> to vector<48x64xbf16>
    %cst_94 = arith.constant dense<0.000000e+00> : vector<96x64xf32>
    %91 = tpu.matmul %89, %90, %cst_94 {dimension_numbers = #tpu.dot_dimension_numbers<[1], [0], [0], [1], [0, 0, 1, 1], [], []>} : vector<96x48xbf16>, vector<48x64xbf16>, vector<96x64xf32> -> vector<96x64xf32>
    %92 = arith.addf %85, %91 : vector<96x64xf32>
    %c0_95 = arith.constant 0 : index
    %c3_96 = arith.constant 3 : index
    %c0_97 = arith.constant 0 : index
    %c0_98 = arith.constant 0 : index
    %93 = vector.load %arg3[%c0_95, %c3_96, %c0_97, %c0_98] : memref<1x4x48x64xf32, #tpu.memory_space<vmem>>, vector<1x1x48x64xf32>
    %94 = vector.shape_cast %93 : vector<1x1x48x64xf32> to vector<48x64xf32>
    %c8 = arith.constant 8 : index
    %c0_99 = arith.constant 0 : index
    %c0_100 = arith.constant 0 : index
    %95 = vector.load %arg7[%c8, %c0_99, %c0_100] : memref<9x96x48xbf16, #tpu.memory_space<vmem>>, vector<1x96x48xbf16>
    %96 = vector.shape_cast %95 : vector<1x96x48xbf16> to vector<96x48xbf16>
    %97 = arith.truncf %94 : vector<48x64xf32> to vector<48x64xbf16>
    %cst_101 = arith.constant dense<0.000000e+00> : vector<96x64xf32>
    %98 = tpu.matmul %96, %97, %cst_101 {dimension_numbers = #tpu.dot_dimension_numbers<[1], [0], [0], [1], [0, 0, 1, 1], [], []>} : vector<96x48xbf16>, vector<48x64xbf16>, vector<96x64xf32> -> vector<96x64xf32>
    %99 = arith.addf %92, %98 : vector<96x64xf32>
    %cst_102 = arith.constant 0.000000e+00 : f32
    %100 = vector.broadcast %cst_102 : f32 to vector<96x64xf32>
    %101 = arith.maximumf %99, %100 : vector<96x64xf32>
    %c0_103 = arith.constant 0 : index
    %c0_104 = arith.constant 0 : index
    %c0_105 = arith.constant 0 : index
    %102 = vector.load %arg11[%c0_103, %c0_104, %c0_105] : memref<1x96x64xf32, #tpu.memory_space<vmem>>, vector<1x96x64xf32>
    %103 = vector.shape_cast %102 : vector<1x96x64xf32> to vector<96x64xf32>
    %104 = vector.shape_cast %101 : vector<96x64xf32> to vector<1x96x64xf32>
    tpu.vector_store %arg11[%c0_103, %c0_104, %c0_105], %104 {strides = array<i32>} : memref<1x96x64xf32, #tpu.memory_space<vmem>>, vector<1x96x64xf32>,
    return
  }
  func.func @transform_0(%arg0: i32) -> (i32, i32, i32) {
    %c0_i32 = arith.constant 0 : i32
    %c0_i32_0 = arith.constant 0 : i32
    %c0_i32_1 = arith.constant 0 : i32
    return %arg0, %c0_i32, %c0_i32_0 : i32, i32, i32
  }
  func.func @transform_1(%arg0: i32) -> (i32, i32, i32) {
    %c0_i32 = arith.constant 0 : i32
    %c0_i32_0 = arith.constant 0 : i32
    %c0_i32_1 = arith.constant 0 : i32
    return %arg0, %c0_i32, %c0_i32_0 : i32, i32, i32
  }
  func.func @transform_2(%arg0: i32) -> (i32, i32, i32, i32) {
    %c0_i32 = arith.constant 0 : i32
    %c0_i32_0 = arith.constant 0 : i32
    %c0_i32_1 = arith.constant 0 : i32
    %c0_i32_2 = arith.constant 0 : i32
    return %arg0, %c0_i32, %c0_i32_0, %c0_i32_1 : i32, i32, i32, i32
  }
  func.func @transform_3(%arg0: i32) -> (i32, i32) {
    %c0_i32 = arith.constant 0 : i32
    %c0_i32_0 = arith.constant 0 : i32
    %c0_i32_1 = arith.constant 0 : i32
    return %c0_i32, %c0_i32_0 : i32, i32
  }
  func.func @transform_4(%arg0: i32) -> (i32, i32) {
    %c0_i32 = arith.constant 0 : i32
    %c0_i32_0 = arith.constant 0 : i32
    %c0_i32_1 = arith.constant 0 : i32
    return %c0_i32, %c0_i32_0 : i32, i32
  }
  func.func @transform_5(%arg0: i32) -> (i32, i32) {
    %c0_i32 = arith.constant 0 : i32
    %c0_i32_0 = arith.constant 0 : i32
    %c0_i32_1 = arith.constant 0 : i32
    return %c0_i32, %c0_i32_0 : i32, i32
  }
  func.func @transform_6(%arg0: i32) -> (i32, i32, i32) {
    %c0_i32 = arith.constant 0 : i32
    %c0_i32_0 = arith.constant 0 : i32
    %c0_i32_1 = arith.constant 0 : i32
    %c0_i32_2 = arith.constant 0 : i32
    return %c0_i32, %c0_i32_0, %c0_i32_1 : i32, i32, i32
  }
  func.func @transform_7(%arg0: i32) -> (i32, i32) {
    %c0_i32 = arith.constant 0 : i32
    %c0_i32_0 = arith.constant 0 : i32
    %c0_i32_1 = arith.constant 0 : i32
    return %c0_i32, %c0_i32_0 : i32, i32
  }
  func.func @transform_8(%arg0: i32) -> (i32, i32, i32) {
    %c0_i32 = arith.constant 0 : i32
    %c0_i32_0 = arith.constant 0 : i32
    %c0_i32_1 = arith.constant 0 : i32
    %c0_i32_2 = arith.constant 0 : i32
    return %c0_i32, %c0_i32_0, %c0_i32_1 : i32, i32, i32
  }
  func.func @transform_9(%arg0: i32) -> (i32, i32, i32) {
    %c0_i32 = arith.constant 0 : i32
    %c0_i32_0 = arith.constant 0 : i32
    %c0_i32_1 = arith.constant 0 : i32
    return %arg0, %c0_i32, %c0_i32_0 : i32, i32, i32
  }
  func.func @transform_10(%arg0: i32) -> (i32, i32, i32) {
    %c0_i32 = arith.constant 0 : i32
    %c0_i32_0 = arith.constant 0 : i32
    %c0_i32_1 = arith.constant 0 : i32
    return %arg0, %c0_i32, %c0_i32_0 : i32, i32, i32
  }
}

</mosaic_0001>

<bundles_post_ra>
// kernel: stage02_fuse.1
= control target key start
LH: loop header
LB: loop body
LE: loop exit
PB: predicated region body
PF: predicated region fallthrough
CT: control target
= control target key end

     0   :  { %s4239_s13 = smov 0   ;;  %s5073_s0 = inlined_call_operand.vmem [shape: f32[2,96,64], index: 0, kind: input, shape index: {}]   ;;  %s5074_s1 = inlined_call_operand.vmem [shape: f32[2,48,256], index: 1, kind: input, shape index: {}]   ;;  %s5075_s2 = inlined_call_operand.vmem [shape: f32[2,4,48,64], index: 2, kind: input, shape index: {}]   ;;  %s5076_s3 = inlined_call_operand.vmem [shape: bf16[48,96], index: 3, kind: input, shape index: {}]   ;;  %s5077_s4 = inlined_call_operand.vmem [shape: f32[48,1], index: 4, kind: input, shape index: {}]   ;;  %s5078_s5 = inlined_call_operand.vmem [shape: bf16[64,256], index: 5, kind: input, shape index: {}]   ;;  %s5079_s6 = inlined_call_operand.vmem [shape: bf16[9,96,48], index: 6, kind: input, shape index: {}]   ;;  %s5080_s7 = inlined_call_operand.vmem [shape: f32[96,1], index: 7, kind: input, shape index: {}]   ;;  %s5081_s8 = inlined_call_operand.vmem [shape: f32[3,64,64], index: 8, kind: input, shape index: {}]   ;;  %s5082_s9 = inlined_call_operand.vmem [shape: f32[2,48,256], index: 9, kind: output, shape index: {0}]   ;;  %s5083_s10 = inlined_call_operand.vmem [shape: f32[2,96,64], index: 10, kind: output, shape index: {1}]  }
   0x1 LB: > { %s3204_s14 = sadd.s32 4294967295, %s4179_s13   ;;  %p3208_p0 = scmp.ge.s32.totalorder %s4179_s13, 1  ;;  %s4179_s13 = sphi %s4239_s13, %s21_s13  }
   0x2   : > { %p335_p1 = scmp.lt.s32.totalorder %s4179_s13, 3 }
   0x4   : > { %p336_p2 = pnand %p3208_p0, %p335_p1 }
   0x6   : > { %339 = sbr.rel (%p336_p2) target bundleno = 829 (0x33d), region = 56 }
   0xb   : > { %p388_p3 = scmp.lt.s32.totalorder %s3204_s14, 1  ;;  %v4181_v0 = vmov 0.0   ;;  %vm4182_vm0 = vmmov 0   ;;  %v4095_v1 = vld [vmem:[%s5078_s5 + $0x34] ss:$8 sps:$4 sm:$0xff]   ;;  %vm453_vm1 = vcmask 785408  }
   0xc   : > { %3721 = vmatprep.subr.bf16.mxu0 %v4181_v0  ;;  %3733 = vmatprep.mubr.msk.bf16.mxu0 %vm4182_vm0, %v4181_v0  ;;  %v4097_v2 = vld [vmem:[%s5078_s5 + $0x30] ss:$8 sps:$4 sm:$0xff]   ;;  %v4098_v3 = vld [vmem:[%s5078_s5 + $0x24] ss:$8 sps:$4 sm:$0xff]   ;;  %v4100_v4 = vld [vmem:[%s5078_s5 + $0x20] ss:$8 sps:$4 sm:$0xff]  }
   0xd   : > { %s5097_s14 = smov (!%p388_p3, %s3204_s14), 1  ;;  %625 = vmatprep.subr.bf16.mxu1 %v4095_v1  ;;  %v4101_v10 = vld [vmem:[%s5078_s5 + $0x14] ss:$8 sps:$4 sm:$0xff]   ;;  %v4103_v14 = vld [vmem:[%s5078_s5 + $0x10] ss:$8 sps:$4 sm:$0xff]   ;;  %v4092_v25 = vld [vmem:[%s5076_s3] sm:$0xff]  }
   0xe   : > { %s4251_s15 = smul.u32 96, %s5097_s14  ;;  %626 = vmatpush1.bf16.msra.mxu1 %v4097_v2  ;;  %v4093_v26 = vld [vmem:[%s5076_s3 + $0x8] sm:$0xff]   ;;  %v4094_v27 = vld [vmem:[%s5076_s3 + $0x10] sm:$0xff]   ;;  %v4183_v30 = vmov 0   ;;  %v728_v34 = vld [vmem:[%s5080_s7] sm:$0xff]  ;;  %vm607_vm2 = vcmask 523264  }
   0xf   : > { %627 = vmatprep.subr.bf16.mxu1 %v4098_v3  ;;  %s4078_s20 = smul.u32 192, %s5097_s14  ;;  %v4104_v28 = vld [vmem:[%s5078_s5 + $0x4] ss:$8 sps:$4 sm:$0xff]   ;;  %v4106_v29 = vld [vmem:[%s5078_s5] ss:$8 sps:$4 sm:$0xff]   ;;  %649 = vmatprep.mubr.bf16.mxu1 %v4183_v30  ;;  %v730_v35 = vld [vmem:[%s5080_s7 + $0x10] sm:$0xff] }
  0x10   : > { %s4266_s24 = scalar_lea.vmem %s5073_s0, %s4251_s15  ;;  %4090 = vset.pattern.permute.xlu0 %v4183_v30  ;;  %4091 = vset.pattern.permute.xlu1 %v4183_v30  ;;  %v729_v36 = vld [vmem:[%s5080_s7 + $0x8] sm:$0xff]  ;;  %v731_v37 = vld [vmem:[%s5080_s7 + $0x18] sm:$0xff]  ;;  %v732_v38 = vld [vmem:[%s5080_s7 + $0x20] sm:$0xff]  ;;  %vm864_vm3 = vcmask 392192   ;;  %s4654_s26 = scalar_lea.vmem %s5074_s1, %s4251_s15 }
  0x11   : > { %v424_v5 = vld [vmem:[%s4266_s24 + $0x50] sm:$0xff]  ;;  %v425_v6 = vld [vmem:[%s4266_s24 + $0x58] sm:$0xff]  ;;  %v422_v7 = vld [vmem:[%s4266_s24 + $0x40] sm:$0xff]  ;;  %s4310_s28 = scalar_lea.vmem %s5075_s2, %s4078_s20  ;;  %742 = vperm.xlu0 %4090, %v728_v34   ;;  %752 = vperm.xlu1 %4091, %v730_v35   ;;  %s4662_s29 = scalar_lea.vmem %s5082_s9, %s4251_s15 }
  0x12   : > { %v437_v8 = vpack.c.bf16 %v425_v6, %v424_v5  ;;  %v423_v9 = vld [vmem:[%s4266_s24 + $0x48] sm:$0xff]  ;;  %v420_v12 = vld [vmem:[%s4266_s24 + $0x30] sm:$0xff]  ;;  %v421_v13 = vld [vmem:[%s4266_s24 + $0x38] sm:$0xff]  ;;  %628 = vmatpush1.bf16.msra.mxu1 %v4100_v4 }
  0x13   : > { %v436_v11 = vpack.c.bf16 %v423_v9, %v422_v7  ;;  %629 = vmatprep.subr.bf16.mxu1 %v4101_v10  ;;  %v418_v15 = vld [vmem:[%s4266_s24 + $0x20] sm:$0xff]  ;;  %v419_v16 = vld [vmem:[%s4266_s24 + $0x28] sm:$0xff]  ;;  %v435_v17 = vpack.c.bf16 %v421_v13, %v420_v12  ;;  %v416_v18 = vld [vmem:[%s4266_s24 + $0x10] sm:$0xff] }
  0x14   : > { %3722 = vmatpush3.bf16.msra.mxu0 %v437_v8  ;;  %v417_v19 = vld [vmem:[%s4266_s24 + $0x18] sm:$0xff]  ;;  %v434_v20 = vpack.c.bf16 %v419_v16, %v418_v15  ;;  %v414_v21 = vld [vmem:[%s4266_s24] sm:$0xff]  ;;  %v415_v22 = vld [vmem:[%s4266_s24 + $0x8] sm:$0xff] }
  0x15   : > { %3723 = vmatprep.subr.bf16.mxu0 %v4181_v0  ;;  %v433_v23 = vpack.c.bf16 %v417_v19, %v416_v18  ;;  %v432_v24 = vpack.c.bf16 %v415_v22, %v414_v21  ;;  %v3235_v31 = vld [vmem:[%s4310_s28 + $0xb0] sm:$0xff]  ;;  %v3236_v32 = vld [vmem:[%s4310_s28 + $0xb8] sm:$0xff]  ;;  %747 = vperm.xlu0 %4090, %v729_v36   ;;  %v733_v39 = vld [vmem:[%s5080_s7 + $0x28] sm:$0xff] }
  0x16   : > { %630 = vmatpush1.bf16.msra.mxu1 %v4103_v14  ;;  %v4316_v33 = vpack.c.bf16 %v3236_v32, %v3235_v31  ;;  %757 = vperm.xlu1 %4091, %v731_v37   ;;  %v734_v40 = vld [vmem:[%s5080_s7 + $0x30] sm:$0xff]  ;;  %v735_v41 = vld [vmem:[%s5080_s7 + $0x38] sm:$0xff]  ;;  %v736_v42 = vld [vmem:[%s5080_s7 + $0x40] sm:$0xff] }
  0x17   : > { %631 = vmatprep.subr.bf16.mxu1 %v4104_v28  ;;  %v737_v43 = vld [vmem:[%s5080_s7 + $0x48] sm:$0xff]  ;;  %v738_v44 = vld [vmem:[%s5080_s7 + $0x50] sm:$0xff]  ;;  %v739_v45 = vld [vmem:[%s5080_s7 + $0x58] sm:$0xff] }
  0x18   : > { %3724 = vmatpush3.bf16.msra.mxu0 %v436_v11  ;;  %v531_v46 = vld [vmem:[%s5077_s4] sm:$0xff]  ;;  %v532_v47 = vld [vmem:[%s5077_s4 + $0x8] sm:$0xff]  ;;  %v533_v48 = vld [vmem:[%s5077_s4 + $0x10] sm:$0xff] }
  0x19   : > { %3725 = vmatprep.subr.bf16.mxu0 %v4181_v0  ;;  %762 = vperm.xlu0 %4090, %v732_v38   ;;  %v534_v49 = vld [vmem:[%s5077_s4 + $0x18] sm:$0xff]  ;;  %v535_v50 = vld [vmem:[%s5077_s4 + $0x20] sm:$0xff]  ;;  %v536_v51 = vld [vmem:[%s5077_s4 + $0x28] sm:$0xff] }
  0x1a   : > { %632 = vmatpush1.bf16.msra.mxu1 %v4106_v29  ;;  %767 = vperm.xlu1 %4091, %v733_v39   ;;  %v3233_v54 = vld [vmem:[%s4310_s28 + $0xa0] sm:$0xff]  ;;  %v3234_v55 = vld [vmem:[%s4310_s28 + $0xa8] sm:$0xff]  ;;  %v3231_v60 = vld [vmem:[%s4310_s28 + $0x90] sm:$0xff] }
  0x1b   : > { %3745 = vmatprep.subr.bf16.mxu1 %v4316_v33  ;;  %v4376_v58 = vpack.c.bf16 %v3234_v55, %v3233_v54  ;;  %v3232_v61 = vld [vmem:[%s4310_s28 + $0x98] sm:$0xff]  ;;  %v3265_v1 = vld [vmem:[%s4310_s28 + $0x80] sm:$0xff]  ;;  %v3266_v2 = vld [vmem:[%s4310_s28 + $0x88] sm:$0xff] }
  0x1c   : > { %3726 = vmatpush3.bf16.msra.mxu0 %v435_v17  ;;  %v4384_v63 = vpack.c.bf16 %v3232_v61, %v3231_v60  ;;  %v4390_v5 = vpack.c.bf16 %v3266_v2, %v3265_v1  ;;  %v4107_v10 = vld [vmem:[%s5079_s6] sm:$0xff]   ;;  %v3263_v13 = vld [vmem:[%s4310_s28 + $0x70] sm:$0xff]  ;;  %v3264_v14 = vld [vmem:[%s4310_s28 + $0x78] sm:$0xff] }
  0x1d   : > { %3727 = vmatprep.subr.bf16.mxu0 %v4181_v0  ;;  %772 = vperm.xlu0 %4090, %v734_v40   ;;  %v4108_v15 = vld [vmem:[%s5079_s6 + $0x8] sm:$0xff]   ;;  %v4109_v16 = vld [vmem:[%s5079_s6 + $0x10] sm:$0xff]   ;;  %v4409_v17 = vpack.c.bf16 %v3264_v14, %v3263_v13  ;;  %v3261_v18 = vld [vmem:[%s4310_s28 + $0x60] sm:$0xff] }
  0x1e   : > { %777 = vperm.xlu1 %4091, %v735_v41   ;;  %v3262_v19 = vld [vmem:[%s4310_s28 + $0x68] sm:$0xff]  ;;  %v4110_v21 = vld [vmem:[%s5079_s6 + $0x18] sm:$0xff]   ;;  %v4111_v22 = vld [vmem:[%s5079_s6 + $0x20] sm:$0xff]  }
  0x1f   : > { %v3352_v28 = vld [vmem:[%s4310_s28 + $0x58] sm:$0xff]  ;;  %v4116_v29 = vld [vmem:[%s5079_s6 + $0x48] sm:$0xff]   ;;  %v4119_v34 = vld [vmem:[%s5079_s6 + $0x60] sm:$0xff]  }
  0x20   : > { %3728 = vmatpush3.bf16.msra.mxu0 %v434_v20  ;;  %v4417_v20 = vpack.c.bf16 %v3262_v19, %v3261_v18  ;;  %v4118_v32 = vld [vmem:[%s5079_s6 + $0x58] sm:$0xff]   ;;  %v3349_v35 = vld [vmem:[%s4310_s28 + $0x40] sm:$0xff]  ;;  %v3350_v36 = vld [vmem:[%s4310_s28 + $0x48] sm:$0xff] }
  0x21   : > { %3729 = vmatprep.subr.bf16.mxu0 %v4181_v0  ;;  %782 = vperm.xlu0 %4090, %v736_v42   ;;  %v4120_v37 = vld [vmem:[%s5079_s6 + $0x68] sm:$0xff]   ;;  %v4121_v38 = vld [vmem:[%s5079_s6 + $0x70] sm:$0xff]   ;;  %v4481_v39 = vpack.c.bf16 %v3350_v36, %v3349_v35  ;;  %v3348_v41 = vld [vmem:[%s4310_s28 + $0x38] sm:$0xff] }
  0x22   : > { %787 = vperm.xlu1 %4091, %v737_v43   ;;  %v3347_v40 = vld [vmem:[%s4310_s28 + $0x30] sm:$0xff]  ;;  %v2132_v43 = vld [vmem:[%s4310_s28 + $0x20] sm:$0xff]  ;;  %v967_v54 = vld [vmem:[%s5081_s8 + $0x18] sm:$0xff] }
  0x23   : > { %v4489_v42 = vpack.c.bf16 %v3348_v41, %v3347_v40  ;;  %v966_v55 = vld [vmem:[%s5081_s8 + $0x10] sm:$0xff]  ;;  %v4126_v60 = vld [vmem:[%s5079_s6 + $0x98] sm:$0xff]   ;;  %v964_v61 = vld [vmem:[%s5081_s8] sm:$0xff] }
  0x24   : > { %3730 = vmatpush3.bf16.msra.mxu0 %v433_v23  ;;  %v4112_v23 = vld [vmem:[%s5079_s6 + $0x28] sm:$0xff]   ;;  %v4547_v1 = vld [vmem:[%s5081_s8 + $0x78] sm:$0xff]  ;;  %v2128_v2 = vld [vmem:[%s4310_s28] sm:$0xff] }
  0x25   : > { %3731 = vmatprep.subr.bf16.mxu0 %v4181_v0  ;;  %792 = vperm.xlu0 %4090, %v738_v44   ;;  %v2133_v44 = vld [vmem:[%s4310_s28 + $0x28] sm:$0xff]  ;;  %v4135_v13 = vld [vmem:[%s5079_s6 + $0xe0] sm:$0xff]   ;;  %v4139_v18 = vld [vmem:[%s5079_s6 + $0x130] sm:$0xff]  }
  0x26   : > { %797 = vperm.xlu1 %4091, %v739_v45   ;;  %v4122_v45 = vld [vmem:[%s5079_s6 + $0x78] sm:$0xff]   ;;  %v4136_v14 = vld [vmem:[%s5079_s6 + $0xe8] sm:$0xff]   ;;  %v680_v36 = vld [vmem:[%s4654_s26] sm:$0xff] }
  0x27   : > { %v4140_v19 = vld [vmem:[%s5079_s6 + $0x138] sm:$0xff]   ;;  %v681_v40 = vld [vmem:[%s4654_s26 + $0x8] sm:$0xff] }
  0x28   : > { %3732 = vmatpush3.bf16.msra.mxu0 %v432_v24  ;;  %v4113_v24 = vld [vmem:[%s5079_s6 + $0x30] sm:$0xff]  }
  0x29   : > { %539 = vperm.xlu0 %4090, %v531_v46   ;;  %v4123_v46 = vld [vmem:[%s5079_s6 + $0x80] sm:$0xff]  }
  0x2a   : > { %544 = vperm.xlu1 %4091, %v532_v47   ;;  %v971_v47 = vld [vmem:[%s5081_s8 + $0x38] sm:$0xff] }
  0x2b   : > { %3734 = vmatmul.mubr.msk.bf16.vlgmr.msra.gmra.mxu0 %vm453_vm1, %v4092_v25  ;;  %v4114_v25 = vld [vmem:[%s5079_s6 + $0x38] sm:$0xff]   ;;  %3763 = vmatprep.subr.mxu0 %v971_v47 }
  0x2c   : > { %3737 = vmatprep.mubr.msk.bf16.mxu0 %vm4182_vm0, %v4181_v0  ;;  %3764 = vmatpush3.msra.mxu0 %v971_v47 }
  0x2d   : > { %549 = vperm.xlu0 %4090, %v533_v48   ;;  %v2149_v48 = vpack.c.bf16 %v2133_v44, %v2132_v43 }
  0x2e   : > { %554 = vperm.xlu1 %4091, %v534_v49   ;;  %v970_v49 = vld [vmem:[%s5081_s8 + $0x30] sm:$0xff] }
  0x2f   : > { %3765 = vmatprep.subr.mxu0 %v970_v49 }
  0x30   : > { %3766 = vmatpush3.msra.mxu0 %v970_v49 }
  0x31   : > { %559 = vperm.xlu0 %4090, %v535_v50   ;;  %v969_v50 = vld [vmem:[%s5081_s8 + $0x28] sm:$0xff] }
  0x32   : > { %564 = vperm.xlu1 %4091, %v536_v51   ;;  %3767 = vmatprep.subr.mxu0 %v969_v50  ;;  %v4124_v51 = vld [vmem:[%s5079_s6 + $0x88] sm:$0xff]  }
  0x33   : > { %3738 = vmatmul.mubr.msk.bf16.gmra.mxu0 %vm453_vm1, %v4093_v26  ;;  %v4115_v26 = vld [vmem:[%s5079_s6 + $0x40] sm:$0xff]  }
  0x34   : > { %3741 = vmatprep.mubr.msk.bf16.mxu0 %vm4182_vm0, %v4181_v0  ;;  %3768 = vmatpush3.msra.mxu0 %v969_v50 }
  0x3b   : > { %3742 = vmatmul.mubr.msk.bf16.gmra.mxu0 %vm453_vm1, %v4094_v27  ;;  %v3351_v27 = vld [vmem:[%s4310_s28 + $0x50] sm:$0xff] }
  0x3c   : > { %v4459_v31 = vpack.c.bf16 %v3352_v28, %v3351_v27 }
  0xeb   : > { %v497_v52 = vpop.f32.mrf.mxu0 }
  0xed   : > { %v3735_v53 = vpop.f32.mrf.mxu0 }
  0xee   : > { %v4125_v53 = vld [vmem:[%s5079_s6 + $0x90] sm:$0xff]  }
  0xef   : > { %v500_v56 = vpop.f32.mrf.mxu0 }
  0xf0   : > { %v520_v57 = vpack.c.bf16 %v500_v56, %v497_v52  ;;  %v968_v52 = vld [vmem:[%s5081_s8 + $0x20] sm:$0xff]  ;;  %v965_v56 = vld [vmem:[%s5081_s8 + $0x8] sm:$0xff] }
  0xf1   : > { %v3736_v59 = vpop.f32.mrf.mxu0  ;;  %3769 = vmatprep.subr.mxu0 %v968_v52 }
  0xf2   : > { %3228 = vmatmul.mubr.msk.bf16.vlgmr.msra.gmra.mxu1 %vm607_vm2, %v520_v57  ;;  %3770 = vmatpush3.msra.mxu0 %v968_v52  ;;  %v2130_v57 = vld [vmem:[%s4310_s28 + $0x10] sm:$0xff]  ;;  %v2131_v59 = vld [vmem:[%s4310_s28 + $0x18] sm:$0xff] }
  0xf3   : > { %3746 = vmatpush3.bf16.msra.mxu1 %v4316_v33  ;;  %v505_v62 = vpop.f32.mrf.mxu0  ;;  %659 = vmatprep.mubr.bf16.mxu1 %v4183_v30 }
  0xf4   : > { %3747 = vmatprep.subr.bf16.mxu1 %v4376_v58  ;;  %3771 = vmatprep.subr.mxu0 %v967_v54 }
  0xf5   : > { %v3739_v0 = vpop.f32.mrf.mxu0  ;;  %3772 = vmatpush3.msra.mxu0 %v967_v54 }
  0xf6   : > { %3773 = vmatprep.subr.mxu0 %v966_v55  ;;  %v2148_v0 = vpack.c.bf16 %v2131_v59, %v2130_v57  ;;  %v684_v57 = vld [vmem:[%s4654_s26 + $0x20] sm:$0xff] }
  0xf7   : > { %v508_v3 = vpop.f32.mrf.mxu0  ;;  %3748 = vmatpush3.bf16.msra.mxu1 %v4376_v58  ;;  %3774 = vmatpush3.msra.mxu0 %v966_v55 }
  0xf8   : > { %v521_v4 = vpack.c.bf16 %v508_v3, %v505_v62  ;;  %3749 = vmatprep.subr.bf16.mxu1 %v4384_v63  ;;  %3775 = vmatprep.subr.mxu0 %v965_v56  ;;  %v4127_v62 = vld [vmem:[%s5079_s6 + $0xa0] sm:$0xff]   ;;  %v2129_v3 = vld [vmem:[%s4310_s28 + $0x8] sm:$0xff] }
  0xf9   : > { %v3740_v6 = vpop.f32.mrf.mxu0  ;;  %3776 = vmatpush3.msra.mxu0 %v965_v56 }
  0xfa   : > { %3229 = vmatmul.mubr.msk.bf16.gmra.mxu1 %vm607_vm2, %v521_v4  ;;  %3777 = vmatprep.subr.mxu0 %v964_v61  ;;  %v2147_v4 = vpack.c.bf16 %v2129_v3, %v2128_v2  ;;  %v4128_v6 = vld [vmem:[%s5079_s6 + $0xa8] sm:$0xff]  }
  0xfb   : > { %v513_v7 = vpop.f32.mrf.mxu0  ;;  %669 = vmatprep.mubr.bf16.mxu1 %v4183_v30  ;;  %3750 = vmatpush3.bf16.msra.mxu1 %v4384_v63  ;;  %v4117_v30 = vld [vmem:[%s5079_s6 + $0x50] sm:$0xff]  }
  0xfc   : > { %3797 = vmatprep.subr.bf16.mxu1 %v4390_v5  ;;  %3778 = vmatpush3.msra.mxu0 %v964_v61 }
  0xfd   : > { %v3743_v8 = vpop.f32.mrf.mxu0  ;;  %3815 = vmatprep.subr.mxu0 %v4547_v1 }
  0xfe   : > { %v4130_v8 = vld [vmem:[%s5079_s6 + $0xb8] sm:$0xff]  }
  0xff   : > { %v516_v9 = vpop.f32.mrf.mxu0 }
 0x100   : > { %v522_v11 = vpack.c.bf16 %v516_v9, %v513_v7  ;;  %v4129_v7 = vld [vmem:[%s5079_s6 + $0xb0] sm:$0xff]   ;;  %v4131_v9 = vld [vmem:[%s5079_s6 + $0xc0] sm:$0xff]  }
 0x101   : > { %v3744_v12 = vpop.f32.mrf.mxu0 }
 0x102   : > { %3230 = vmatmul.mubr.msk.bf16.gmra.mxu1 %vm607_vm2, %v522_v11  ;;  %v4133_v11 = vld [vmem:[%s5079_s6 + $0xd0] sm:$0xff]   ;;  %v4134_v12 = vld [vmem:[%s5079_s6 + $0xd8] sm:$0xff]  }
 0x103   : > { %3751 = vmatprep.mubr.msk.bf16.mxu1 %vm864_vm3, %v4107_v10  ;;  %v4132_v10 = vld [vmem:[%s5079_s6 + $0xc8] sm:$0xff]  }
 0x10a   : > { %3752 = vmatmul.mubr.msk.bf16.vlgmr.msra.gmra.mxu1 %vm864_vm3, %v4108_v15  ;;  %v4137_v15 = vld [vmem:[%s5079_s6 + $0x120] sm:$0xff]  }
 0x10b   : > { %3798 = vmatpush3.bf16.msra.mxu1 %v4390_v5  ;;  %3755 = vmatprep.mubr.msk.bf16.mxu1 %vm864_vm3, %v4109_v16  ;;  %v4138_v16 = vld [vmem:[%s5079_s6 + $0x128] sm:$0xff]  }
 0x10c   : > { %3799 = vmatprep.subr.bf16.mxu1 %v4409_v17 }
 0x10f   : > { %3800 = vmatpush3.bf16.msra.mxu1 %v4409_v17 }
 0x110   : > { %3801 = vmatprep.subr.bf16.mxu1 %v4417_v20 }
 0x112   : > { %3756 = vmatmul.mubr.msk.bf16.gmra.mxu1 %vm864_vm3, %v4110_v21  ;;  %v4141_v21 = vld [vmem:[%s5079_s6 + $0x140] sm:$0xff]  }
 0x113   : > { %3759 = vmatprep.mubr.msk.bf16.mxu1 %vm864_vm3, %v4111_v22  ;;  %3802 = vmatpush3.bf16.msra.mxu1 %v4417_v20  ;;  %v4142_v22 = vld [vmem:[%s5079_s6 + $0x148] sm:$0xff]  }
 0x114   : > { %3849 = vmatprep.subr.bf16.mxu1 %v4316_v33 }
 0x11a   : > { %3760 = vmatmul.mubr.msk.bf16.gmra.mxu1 %vm864_vm3, %v4112_v23  ;;  %v4627_v23 = vpop.permute.xlu1 %752 }
 0x11b   : > { %3803 = vmatprep.mubr.msk.bf16.mxu1 %vm864_vm3, %v4113_v24 }
 0x11e   : > { %v4632_v24 = vpop.permute.xlu1 %757 }
 0x122   : > { %3804 = vmatmul.mubr.msk.bf16.vlgmr.msra.gmra.mxu1 %vm864_vm3, %v4114_v25 }
 0x123   : > { %3850 = vmatpush3.bf16.msra.mxu1 %v4316_v33  ;;  %3807 = vmatprep.mubr.msk.bf16.mxu1 %vm864_vm3, %v4115_v26  ;;  %v4636_v26 = vpop.permute.xlu1 %767 }
 0x124   : > { %3851 = vmatprep.subr.bf16.mxu1 %v4376_v58 }
 0x127   : > { %3852 = vmatpush3.bf16.msra.mxu1 %v4376_v58 }
 0x128   : > { %3853 = vmatprep.subr.bf16.mxu1 %v4384_v63 }
 0x12a   : > { %3808 = vmatmul.mubr.msk.bf16.gmra.mxu1 %vm864_vm3, %v4116_v29 }
 0x12b   : > { %3811 = vmatprep.mubr.msk.bf16.mxu1 %vm864_vm3, %v4117_v30  ;;  %3854 = vmatpush3.bf16.msra.mxu1 %v4384_v63 }
 0x12c   : > { %3901 = vmatprep.subr.bf16.mxu1 %v4459_v31 }
 0x132   : > { %3812 = vmatmul.mubr.msk.bf16.gmra.mxu1 %vm864_vm3, %v4118_v32 }
 0x133   : > { %3855 = vmatprep.mubr.msk.bf16.mxu1 %vm864_vm3, %v4119_v34 }
 0x13a   : > { %3856 = vmatmul.mubr.msk.bf16.vlgmr.msra.gmra.mxu1 %vm864_vm3, %v4120_v37 }
 0x13b   : > { %3902 = vmatpush3.bf16.msra.mxu1 %v4459_v31  ;;  %3859 = vmatprep.mubr.msk.bf16.mxu1 %vm864_vm3, %v4121_v38 }
 0x13c   : > { %3903 = vmatprep.subr.bf16.mxu1 %v4481_v39 }
 0x13f   : > { %3904 = vmatpush3.bf16.msra.mxu1 %v4481_v39 }
 0x140   : > { %3905 = vmatprep.subr.bf16.mxu1 %v4489_v42 }
 0x142   : > { %3860 = vmatmul.mubr.msk.bf16.gmra.mxu1 %vm864_vm3, %v4122_v45 }
 0x143   : > { %3863 = vmatprep.mubr.msk.bf16.mxu1 %vm864_vm3, %v4123_v46  ;;  %3906 = vmatpush3.bf16.msra.mxu1 %v4489_v42  ;;  %v682_v46 = vld [vmem:[%s4654_s26 + $0x10] sm:$0xff] }
 0x144   : > { %3953 = vmatprep.subr.bf16.mxu1 %v2149_v48 }
 0x14a   : > { %3864 = vmatmul.mubr.msk.bf16.gmra.mxu1 %vm864_vm3, %v4124_v51  ;;  %v683_v51 = vld [vmem:[%s4654_s26 + $0x18] sm:$0xff] }
 0x14b   : > { %3907 = vmatprep.mubr.msk.bf16.mxu1 %vm864_vm3, %v4125_v53 }
 0x152   : > { %3908 = vmatmul.mubr.msk.bf16.vlgmr.msra.gmra.mxu1 %vm864_vm3, %v4126_v60 }
 0x153   : > { %3954 = vmatpush3.bf16.msra.mxu1 %v2149_v48  ;;  %3911 = vmatprep.mubr.msk.bf16.mxu1 %vm864_vm3, %v4127_v62 }
 0x154   : > { %3955 = vmatprep.subr.bf16.mxu1 %v2148_v0 }
 0x157   : > { %3956 = vmatpush3.bf16.msra.mxu1 %v2148_v0  ;;  %v685_v0 = vld [vmem:[%s4654_s26 + $0x28] sm:$0xff] }
 0x158   : > { %3957 = vmatprep.subr.bf16.mxu1 %v2147_v4 }
 0x15a   : > { %3912 = vmatmul.mubr.msk.bf16.gmra.mxu1 %vm864_vm3, %v4128_v6 }
 0x15b   : > { %3915 = vmatprep.mubr.msk.bf16.mxu1 %vm864_vm3, %v4129_v7  ;;  %3958 = vmatpush3.bf16.msra.mxu1 %v2147_v4 }
 0x15c   : > { %3989 = vmatprep.subr.bf16.mxu1 %v4316_v33 }
 0x162   : > { %3916 = vmatmul.mubr.msk.bf16.gmra.mxu1 %vm864_vm3, %v4130_v8  ;;  %v686_v8 = vld [vmem:[%s4654_s26 + $0x30] sm:$0xff] }
 0x163   : > { %3959 = vmatprep.mubr.msk.bf16.mxu1 %vm864_vm3, %v4131_v9 }
 0x16a   : > { %3960 = vmatmul.mubr.msk.bf16.vlgmr.msra.gmra.mxu1 %vm864_vm3, %v4132_v10 }
 0x16b   : > { %3990 = vmatpush3.bf16.msra.mxu1 %v4316_v33  ;;  %3963 = vmatprep.mubr.msk.bf16.mxu1 %vm864_vm3, %v4133_v11 }
 0x16c   : > { %3991 = vmatprep.subr.bf16.mxu1 %v4376_v58 }
 0x16f   : > { %3992 = vmatpush3.bf16.msra.mxu1 %v4376_v58 }
 0x170   : > { %3993 = vmatprep.subr.bf16.mxu1 %v4384_v63 }
 0x172   : > { %3964 = vmatmul.mubr.msk.bf16.gmra.mxu1 %vm864_vm3, %v4134_v12 }
 0x173   : > { %3967 = vmatprep.mubr.msk.bf16.mxu1 %vm864_vm3, %v4135_v13  ;;  %3994 = vmatpush3.bf16.msra.mxu1 %v4384_v63  ;;  %v687_v13 = vld [vmem:[%s4654_s26 + $0x38] sm:$0xff] }
 0x174   : > { %4041 = vmatprep.subr.bf16.mxu1 %v4390_v5 }
 0x17a   : > { %3968 = vmatmul.mubr.msk.bf16.gmra.mxu1 %vm864_vm3, %v4136_v14 }
 0x17b   : > { %3995 = vmatprep.mubr.msk.bf16.mxu1 %vm864_vm3, %v4137_v15 }
 0x182   : > { %3996 = vmatmul.mubr.msk.bf16.vlgmr.msra.gmra.mxu1 %vm864_vm3, %v4138_v16 }
 0x183   : > { %3999 = vmatprep.mubr.msk.bf16.mxu1 %vm864_vm3, %v4139_v18  ;;  %4042 = vmatpush3.bf16.msra.mxu1 %v4390_v5  ;;  %v4622_v5 = vpop.permute.xlu0 %742 }
 0x184   : > { %4043 = vmatprep.subr.bf16.mxu1 %v4409_v17 }
 0x187   : > { %4044 = vmatpush3.bf16.msra.mxu1 %v4409_v17  ;;  %v4630_v17 = vpop.permute.xlu0 %747 }
 0x188   : > { %4045 = vmatprep.subr.bf16.mxu1 %v4417_v20 }
 0x18a   : > { %4000 = vmatmul.mubr.msk.bf16.gmra.mxu1 %vm864_vm3, %v4140_v19 }
 0x18b   : > { %4003 = vmatprep.mubr.msk.bf16.mxu1 %vm864_vm3, %v4141_v21  ;;  %4046 = vmatpush3.bf16.msra.mxu1 %v4417_v20  ;;  %v4634_v25 = vpop.permute.xlu0 %762  ;;  %v4640_v20 = vpop.permute.xlu1 %777  ;;  %v688_v21 = vld [vmem:[%s4654_s26 + $0x40] sm:$0xff] }
 0x18f   : > { %v4638_v27 = vpop.permute.xlu0 %772  ;;  %v4644_v29 = vpop.permute.xlu1 %787 }
 0x192   : > { %4004 = vmatmul.mubr.msk.bf16.gmra.mxu1 %vm864_vm3, %v4142_v22  ;;  %v4149_v22 = vld [vmem:[%s5079_s6 + $0x150] sm:$0xff]  }
 0x193   : > { %v4642_v28 = vpop.permute.xlu0 %782  ;;  %v4648_v32 = vpop.permute.xlu1 %797  ;;  %4047 = vmatprep.mubr.msk.bf16.mxu1 %vm864_vm3, %v4149_v22 }
 0x197   : > { %v4646_v30 = vpop.permute.xlu0 %792  ;;  %v545_v41 = vpop.permute.xlu1 %544 }
 0x19b   : > { %v540_v34 = vpop.permute.xlu0 %539  ;;  %v555_v2 = vpop.permute.xlu1 %554 }
 0x19f   : > { %v550_v52 = vpop.permute.xlu0 %549 }
 0x1a3   : > { %v560_v14 = vpop.permute.xlu0 %559 }
 0x1b2   : > { %v651_v35 = vpop.f32.mrf.mxu1 }
 0x1b3   : > { %v652_v37 = vadd.f32 %v651_v35, %v540_v34 }
 0x1b4   : > { %v653_v38 = vpop.f32.mrf.mxu1 }
 0x1b5   : > { %v692_v43 = vadd.f32 %v680_v36, %v652_v37  ;;  %v654_v44 = vadd.f32 %v653_v38, %v540_v34  ;;  %v4150_v37 = vld [vmem:[%s5079_s6 + $0x158] sm:$0xff]  }
 0x1b6   : > { %v655_v45 = vpop.f32.mrf.mxu1  ;;  %4048 = vmatmul.mubr.msk.bf16.vlgmr.msra.gmra.mxu1 %vm864_vm3, %v4150_v37 }
 0x1b7   : > { %v704_v47 = vmax.f32 %v692_v43, 0.0  ;;  %v693_v48 = vadd.f32 %v681_v40, %v654_v44  ;;  %v656_v49 = vadd.f32 %v655_v45, %v545_v41  ;;  %v689_v40 = vld [vmem:[%s4654_s26 + $0x48] sm:$0xff] }
 0x1b8   : > { %v657_v50 = vpop.f32.mrf.mxu1 }
 0x1b9   : > { %716 = vst [vmem:[%s4662_s29] sm:$0xff] %v704_v47  ;;  %v705_v53 = vmax.f32 %v693_v48, 0.0  ;;  %v694_v54 = vadd.f32 %v682_v46, %v656_v49  ;;  %v658_v55 = vadd.f32 %v657_v50, %v545_v41  ;;  %v565_v41 = vpop.permute.xlu1 %564  ;;  %v690_v47 = vld [vmem:[%s4654_s26 + $0x50] sm:$0xff] }
 0x1ba   : > { %v661_v56 = vpop.f32.mrf.mxu1 }
 0x1bb   : > { %717 = vst [vmem:[%s4662_s29 + $0x8] sm:$0xff] %v705_v53  ;;  %v706_v59 = vmax.f32 %v694_v54, 0.0  ;;  %v695_v60 = vadd.f32 %v683_v51, %v658_v55  ;;  %v662_v61 = vadd.f32 %v661_v56, %v550_v52 }
 0x1bc   : > { %v663_v62 = vpop.f32.mrf.mxu1 }
 0x1bd   : > { %718 = vst [vmem:[%s4662_s29 + $0x10] sm:$0xff] %v706_v59  ;;  %v707_v3 = vmax.f32 %v695_v60, 0.0  ;;  %v696_v4 = vadd.f32 %v684_v57, %v662_v61  ;;  %v664_v6 = vadd.f32 %v663_v62, %v550_v52  ;;  %v691_v52 = vld [vmem:[%s4654_s26 + $0x58] sm:$0xff]  ;;  %v4151_v57 = vld [vmem:[%s5079_s6 + $0x160] sm:$0xff]   ;;  %v4152_v61 = vld [vmem:[%s5079_s6 + $0x168] sm:$0xff]  }
 0x1be   : > { %v665_v7 = vpop.f32.mrf.mxu1  ;;  %4051 = vmatprep.mubr.msk.bf16.mxu1 %vm864_vm3, %v4151_v57  ;;  %v4783_v57 = vld [vmem:[%s5081_s8 + $0xa0] sm:$0xff] }
 0x1bf   : > { %719 = vst [vmem:[%s4662_s29 + $0x18] sm:$0xff] %v707_v3  ;;  %v708_v9 = vmax.f32 %v696_v4, 0.0  ;;  %v697_v10 = vadd.f32 %v685_v0, %v664_v6  ;;  %v666_v11 = vadd.f32 %v665_v7, %v555_v2  ;;  %4052 = vmatmul.mubr.msk.bf16.gmra.mxu1 %vm864_vm3, %v4152_v61  ;;  %v3297_v4 = vld [vmem:[%s5081_s8 + $0x70] sm:$0xff]  ;;  %v3296_v7 = vld [vmem:[%s5081_s8 + $0x68] sm:$0xff] }
 0x1c0   : > { %v667_v12 = vpop.f32.mrf.mxu1 }
 0x1c1   : > { %720 = vst [vmem:[%s4662_s29 + $0x20] sm:$0xff] %v708_v9  ;;  %v709_v15 = vmax.f32 %v697_v10, 0.0  ;;  %v698_v16 = vadd.f32 %v686_v8, %v666_v11  ;;  %v668_v18 = vadd.f32 %v667_v12, %v555_v2  ;;  %v4153_v8 = vld [vmem:[%s5079_s6 + $0x170] sm:$0xff]   ;;  %v4154_v9 = vld [vmem:[%s5079_s6 + $0x178] sm:$0xff]   ;;  %v3295_v11 = vld [vmem:[%s5081_s8 + $0x60] sm:$0xff] }
 0x1c2   : > { %v671_v19 = vpop.f32.mrf.mxu1  ;;  %4055 = vmatprep.mubr.msk.bf16.mxu1 %vm864_vm3, %v4153_v8 }
 0x1c3   : > { %721 = vst [vmem:[%s4662_s29 + $0x28] sm:$0xff] %v709_v15  ;;  %v710_v34 = vmax.f32 %v698_v16, 0.0  ;;  %v699_v35 = vadd.f32 %v687_v13, %v668_v18  ;;  %v672_v36 = vadd.f32 %v671_v19, %v560_v14  ;;  %v3294_v13 = vld [vmem:[%s5081_s8 + $0x58] sm:$0xff]  ;;  %v3293_v15 = vld [vmem:[%s5081_s8 + $0x50] sm:$0xff]  ;;  %v3292_v18 = vld [vmem:[%s5081_s8 + $0x48] sm:$0xff] }
 0x1c4   : > { %v673_v38 = vpop.f32.mrf.mxu1 }
 0x1c5   : > { %722 = vst [vmem:[%s4662_s29 + $0x30] sm:$0xff] %v710_v34  ;;  %v711_v43 = vmax.f32 %v699_v35, 0.0  ;;  %v700_v44 = vadd.f32 %v688_v21, %v672_v36  ;;  %v674_v45 = vadd.f32 %v673_v38, %v560_v14  ;;  %v3291_v21 = vld [vmem:[%s5081_s8 + $0x40] sm:$0xff] }
 0x1c6   : > { %v675_v46 = vpop.f32.mrf.mxu1 }
 0x1c7   : > { %723 = vst [vmem:[%s4662_s29 + $0x38] sm:$0xff] %v711_v43  ;;  %v712_v48 = vmax.f32 %v700_v44, 0.0  ;;  %v701_v49 = vadd.f32 %v689_v40, %v674_v45  ;;  %v676_v50 = vadd.f32 %v675_v46, %v565_v41  ;;  %4056 = vmatmul.mubr.msk.bf16.gmra.mxu1 %vm864_vm3, %v4154_v9 }
 0x1c8   : > { %v677_v51 = vpop.f32.mrf.mxu1 }
 0x1c9   : > { %724 = vst [vmem:[%s4662_s29 + $0x40] sm:$0xff] %v712_v48  ;;  %v713_v53 = vmax.f32 %v701_v49, 0.0  ;;  %v702_v54 = vadd.f32 %v690_v47, %v676_v50  ;;  %v678_v55 = vadd.f32 %v677_v51, %v565_v41  ;;  %v4758_v47 = vld [vmem:[%s5081_s8 + $0xb8] sm:$0xff] }
 0x1ca   : > { %v3753_v56 = vpop.f32.mrf.mxu1 }
 0x1cb   : > { %725 = vst [vmem:[%s4662_s29 + $0x48] sm:$0xff] %v713_v53  ;;  %v714_v59 = vmax.f32 %v702_v54, 0.0  ;;  %v703_v60 = vadd.f32 %v691_v52, %v678_v55  ;;  %v4768_v53 = vld [vmem:[%s5081_s8 + $0xb0] sm:$0xff]  ;;  %v4776_v55 = vld [vmem:[%s5081_s8 + $0xa8] sm:$0xff] }
 0x1cc   : > { %v917_v62 = vpop.f32.mrf.mxu1 }
 0x1cd   : > { %726 = vst [vmem:[%s4662_s29 + $0x50] sm:$0xff] %v714_v59  ;;  %v715_v0 = vmax.f32 %v703_v60, 0.0  ;;  %3779 = vmatprep.mubr.msk.f32.mxu0 %vm607_vm2, %v917_v62  ;;  %v4792_v60 = vld [vmem:[%s5081_s8 + $0x98] sm:$0xff]  ;;  %v4799_v62 = vld [vmem:[%s5081_s8 + $0x90] sm:$0xff] }
 0x1ce   : > { %v3754_v2 = vpop.f32.mrf.mxu1 }
 0x1cf   : > { %727 = vst [vmem:[%s4662_s29 + $0x58] sm:$0xff] %v715_v0  ;;  %s5024_s29 = scalar_lea.vmem %s5083_s10, %s4251_s15 }
 0x1d0   : > { %v920_v3 = vpop.f32.mrf.mxu1 }
 0x1d1   : > { %3780 = vmatmul.mubr.msk.f32.vlgmr.msra.gmra.mxu0 %vm607_vm2, %v920_v3 }
 0x1d2   : > { %3816 = vmatpush3.msra.mxu0 %v4547_v1  ;;  %v3757_v6 = vpop.f32.mrf.mxu1  ;;  %3782 = vmatprep.mubr.msk.f32.mxu0 %vm607_vm2, %v3753_v56 }
 0x1d3   : > { %3817 = vmatprep.subr.mxu0 %v3297_v4 }
 0x1d4   : > { %v933_v10 = vpop.f32.mrf.mxu1  ;;  %3818 = vmatpush3.msra.mxu0 %v3297_v4 }
 0x1d5   : > { %3783 = vmatmul.mubr.msk.f32.gmra.mxu0 %vm607_vm2, %v3754_v2  ;;  %3819 = vmatprep.subr.mxu0 %v3296_v7  ;;  %v4808_v2 = vld [vmem:[%s5081_s8 + $0x88] sm:$0xff] }
 0x1d6   : > { %v3758_v12 = vpop.f32.mrf.mxu1  ;;  %3785 = vmatprep.mubr.msk.f32.mxu0 %vm607_vm2, %v933_v10  ;;  %3820 = vmatpush3.msra.mxu0 %v3296_v7 }
 0x1d7   : > { %3821 = vmatprep.subr.mxu0 %v3295_v11 }
 0x1d8   : > { %v936_v14 = vpop.f32.mrf.mxu1  ;;  %3822 = vmatpush3.msra.mxu0 %v3295_v11 }
 0x1d9   : > { %3786 = vmatmul.mubr.msk.f32.gmra.mxu0 %vm607_vm2, %v936_v14  ;;  %3823 = vmatprep.subr.mxu0 %v3294_v13 }
 0x1da   : > { %v3761_v16 = vpop.f32.mrf.mxu1  ;;  %3788 = vmatprep.mubr.msk.f32.mxu0 %vm607_vm2, %v3757_v6  ;;  %3824 = vmatpush3.msra.mxu0 %v3294_v13 }
 0x1db   : > { %3825 = vmatprep.subr.mxu0 %v3293_v15 }
 0x1dc   : > { %v949_v19 = vpop.f32.mrf.mxu1  ;;  %3826 = vmatpush3.msra.mxu0 %v3293_v15 }
 0x1dd   : > { %3789 = vmatmul.mubr.msk.f32.gmra.mxu0 %vm607_vm2, %v3758_v12  ;;  %3827 = vmatprep.subr.mxu0 %v3292_v18 }
 0x1de   : > { %v3762_v22 = vpop.f32.mrf.mxu1  ;;  %3791 = vmatprep.mubr.msk.f32.mxu0 %vm607_vm2, %v949_v19  ;;  %3828 = vmatpush3.msra.mxu0 %v3292_v18 }
 0x1df   : > { %3829 = vmatprep.subr.mxu0 %v3291_v21 }
 0x1e0   : > { %v952_v34 = vpop.f32.mrf.mxu1  ;;  %3830 = vmatpush3.msra.mxu0 %v3291_v21 }
 0x1e1   : > { %3792 = vmatmul.mubr.msk.f32.gmra.mxu0 %vm607_vm2, %v952_v34  ;;  %3867 = vmatprep.subr.mxu0 %v4547_v1 }
 0x1e2   : > { %3794 = vmatprep.mubr.msk.f32.mxu0 %vm607_vm2, %v3761_v16  ;;  %v3805_v35 = vpop.f32.mrf.mxu1 }
 0x1e4   : > { %v1250_v36 = vpop.f32.mrf.mxu1 }
 0x1e5   : > { %3795 = vmatmul.mubr.msk.f32.gmra.mxu0 %vm607_vm2, %v3762_v22  ;;  %v4144_v22 = vld [vmem:[%s5079_s6 + $0xf8] sm:$0xff]  }
 0x1e6   : > { %v3806_v37 = vpop.f32.mrf.mxu1  ;;  %3831 = vmatprep.mubr.msk.f32.mxu0 %vm607_vm2, %v1250_v36 }
 0x1e8   : > { %v1253_v38 = vpop.f32.mrf.mxu1 }
 0x1e9   : > { %3832 = vmatmul.mubr.msk.f32.vlgmr.msra.gmra.mxu0 %vm607_vm2, %v1253_v38 }
 0x1ea   : > { %3868 = vmatpush3.msra.mxu0 %v4547_v1  ;;  %v3809_v40 = vpop.f32.mrf.mxu1  ;;  %3834 = vmatprep.mubr.msk.f32.mxu0 %vm607_vm2, %v3805_v35  ;;  %v4145_v35 = vld [vmem:[%s5079_s6 + $0x100] sm:$0xff]  }
 0x1eb   : > { %3869 = vmatprep.subr.mxu0 %v3297_v4 }
 0x1ec   : > { %v1266_v41 = vpop.f32.mrf.mxu1  ;;  %3870 = vmatpush3.msra.mxu0 %v3297_v4  ;;  %v4815_v4 = vld [vmem:[%s5081_s8 + $0x80] sm:$0xff] }
 0x1ed   : > { %3835 = vmatmul.mubr.msk.f32.gmra.mxu0 %vm607_vm2, %v3806_v37  ;;  %3871 = vmatprep.subr.mxu0 %v3296_v7 }
 0x1ee   : > { %v3810_v43 = vpop.f32.mrf.mxu1  ;;  %3837 = vmatprep.mubr.msk.f32.mxu0 %vm607_vm2, %v1266_v41  ;;  %3872 = vmatpush3.msra.mxu0 %v3296_v7 }
 0x1ef   : > { %3873 = vmatprep.subr.mxu0 %v3295_v11 }
 0x1f0   : > { %v1269_v44 = vpop.f32.mrf.mxu1  ;;  %3874 = vmatpush3.msra.mxu0 %v3295_v11 }
 0x1f1   : > { %3838 = vmatmul.mubr.msk.f32.gmra.mxu0 %vm607_vm2, %v1269_v44  ;;  %3875 = vmatprep.subr.mxu0 %v3294_v13 }
 0x1f2   : > { %v3813_v1 = vpop.f32.mrf.mxu1  ;;  %3840 = vmatprep.mubr.msk.f32.mxu0 %vm607_vm2, %v3809_v40  ;;  %3876 = vmatpush3.msra.mxu0 %v3294_v13  ;;  %v4146_v40 = vld [vmem:[%s5079_s6 + $0x108] sm:$0xff]  }
 0x1f3   : > { %3877 = vmatprep.subr.mxu0 %v3293_v15 }
 0x1f4   : > { %v1282_v45 = vpop.f32.mrf.mxu1  ;;  %3878 = vmatpush3.msra.mxu0 %v3293_v15 }
 0x1f5   : > { %3841 = vmatmul.mubr.msk.f32.gmra.mxu0 %vm607_vm2, %v3810_v43  ;;  %3879 = vmatprep.subr.mxu0 %v3292_v18  ;;  %v4147_v43 = vld [vmem:[%s5079_s6 + $0x110] sm:$0xff]  }
 0x1f6   : > { %v3814_v46 = vpop.f32.mrf.mxu1  ;;  %3843 = vmatprep.mubr.msk.f32.mxu0 %vm607_vm2, %v1282_v45  ;;  %3880 = vmatpush3.msra.mxu0 %v3292_v18 }
 0x1f7   : > { %3881 = vmatprep.subr.mxu0 %v3291_v21 }
 0x1f8   : > { %v1285_v48 = vpop.f32.mrf.mxu1  ;;  %3882 = vmatpush3.msra.mxu0 %v3291_v21  ;;  %v4143_v21 = vld [vmem:[%s5079_s6 + $0xf0] sm:$0xff]  }
 0x1f9   : > { %3844 = vmatmul.mubr.msk.f32.gmra.mxu0 %vm607_vm2, %v1285_v48  ;;  %3919 = vmatprep.subr.mxu0 %v4758_v47 }
 0x1fa   : > { %3846 = vmatprep.mubr.msk.f32.mxu0 %vm607_vm2, %v3813_v1  ;;  %v3857_v49 = vpop.f32.mrf.mxu1 }
 0x1fc   : > { %v1574_v50 = vpop.f32.mrf.mxu1 }
 0x1fd   : > { %3847 = vmatmul.mubr.msk.f32.gmra.mxu0 %vm607_vm2, %v3814_v46  ;;  %v4148_v46 = vld [vmem:[%s5079_s6 + $0x118] sm:$0xff]  }
 0x1fe   : > { %v3858_v51 = vpop.f32.mrf.mxu1  ;;  %3883 = vmatprep.mubr.msk.f32.mxu0 %vm607_vm2, %v1574_v50 }
 0x200   : > { %v1577_v52 = vpop.f32.mrf.mxu1 }
 0x201   : > { %3884 = vmatmul.mubr.msk.f32.vlgmr.msra.gmra.mxu0 %vm607_vm2, %v1577_v52 }
 0x202   : > { %3920 = vmatpush3.msra.mxu0 %v4758_v47  ;;  %v3861_v54 = vpop.f32.mrf.mxu1  ;;  %3886 = vmatprep.mubr.msk.f32.mxu0 %vm607_vm2, %v3857_v49 }
 0x203   : > { %3921 = vmatprep.subr.mxu0 %v4768_v53 }
 0x204   : > { %v1590_v56 = vpop.f32.mrf.mxu1  ;;  %3922 = vmatpush3.msra.mxu0 %v4768_v53 }
 0x205   : > { %3887 = vmatmul.mubr.msk.f32.gmra.mxu0 %vm607_vm2, %v3858_v51  ;;  %3923 = vmatprep.subr.mxu0 %v4776_v55 }
 0x206   : > { %v3862_v59 = vpop.f32.mrf.mxu1  ;;  %3889 = vmatprep.mubr.msk.f32.mxu0 %vm607_vm2, %v1590_v56  ;;  %3924 = vmatpush3.msra.mxu0 %v4776_v55 }
 0x207   : > { %3925 = vmatprep.subr.mxu0 %v4783_v57 }
 0x208   : > { %v1593_v61 = vpop.f32.mrf.mxu1  ;;  %3926 = vmatpush3.msra.mxu0 %v4783_v57 }
 0x209   : > { %3890 = vmatmul.mubr.msk.f32.gmra.mxu0 %vm607_vm2, %v1593_v61  ;;  %3927 = vmatprep.subr.mxu0 %v4792_v60  ;;  %v4157_v61 = vld [vmem:[%s5079_s6 + $0x190] sm:$0xff]  }
 0x20a   : > { %v3865_v0 = vpop.f32.mrf.mxu1  ;;  %3892 = vmatprep.mubr.msk.f32.mxu0 %vm607_vm2, %v3861_v54  ;;  %3928 = vmatpush3.msra.mxu0 %v4792_v60 }
 0x20b   : > { %3929 = vmatprep.subr.mxu0 %v4799_v62 }
 0x20c   : > { %v1606_v3 = vpop.f32.mrf.mxu1  ;;  %3930 = vmatpush3.msra.mxu0 %v4799_v62 }
 0x20d   : > { %3893 = vmatmul.mubr.msk.f32.gmra.mxu0 %vm607_vm2, %v3862_v59  ;;  %3931 = vmatprep.subr.mxu0 %v4808_v2 }
 0x20e   : > { %v3866_v6 = vpop.f32.mrf.mxu1  ;;  %3895 = vmatprep.mubr.msk.f32.mxu0 %vm607_vm2, %v1606_v3  ;;  %3932 = vmatpush3.msra.mxu0 %v4808_v2  ;;  %v4161_v3 = vld [vmem:[%s4266_s24 + $0x8] sm:$0xff] }
 0x20f   : > { %3933 = vmatprep.subr.mxu0 %v4815_v4 }
 0x210   : > { %v1609_v7 = vpop.f32.mrf.mxu1  ;;  %3934 = vmatpush3.msra.mxu0 %v4815_v4 }
 0x211   : > { %3896 = vmatmul.mubr.msk.f32.gmra.mxu0 %vm607_vm2, %v1609_v7  ;;  %3971 = vmatprep.subr.bf16.mxu0 %v4459_v31 }
 0x212   : > { %3898 = vmatprep.mubr.msk.f32.mxu0 %vm607_vm2, %v3865_v0  ;;  %v3909_v8 = vpop.f32.mrf.mxu1  ;;  %v4159_v0 = vld [vmem:[%s5079_s6 + $0x1a0] sm:$0xff]  }
 0x214   : > { %v1899_v9 = vpop.f32.mrf.mxu1 }
 0x215   : > { %3899 = vmatmul.mubr.msk.f32.gmra.mxu0 %vm607_vm2, %v3866_v6  ;;  %v4162_v6 = vld [vmem:[%s4266_s24] sm:$0xff] }
 0x216   : > { %v3910_v10 = vpop.f32.mrf.mxu1  ;;  %3935 = vmatprep.mubr.msk.f32.mxu0 %vm607_vm2, %v1899_v9  ;;  %v800_v7 = vadd.f32 %v4162_v6, %v4622_v5  ;;  %v4163_v9 = vld [vmem:[%s4266_s24 + $0x18] sm:$0xff]  ;;  %v4166_v5 = vld [vmem:[%s4266_s24 + $0x20] sm:$0xff] }
 0x218   : > { %v1902_v11 = vpop.f32.mrf.mxu1 }
 0x219   : > { %3936 = vmatmul.mubr.msk.f32.vlgmr.msra.gmra.mxu0 %vm607_vm2, %v1902_v11 }
 0x21a   : > { %3972 = vmatpush3.bf16.msra.mxu0 %v4459_v31  ;;  %v3913_v12 = vpop.f32.mrf.mxu1  ;;  %3938 = vmatprep.mubr.msk.f32.mxu0 %vm607_vm2, %v3909_v8 }
 0x21b   : > { %3973 = vmatprep.subr.bf16.mxu0 %v4481_v39 }
 0x21c   : > { %v1915_v13 = vpop.f32.mrf.mxu1 }
 0x21d   : > { %3939 = vmatmul.mubr.msk.f32.gmra.mxu0 %vm607_vm2, %v3910_v10  ;;  %v803_v10 = vadd.f32 %v4163_v9, %v4632_v24 }
 0x21e   : > { %v3914_v14 = vpop.f32.mrf.mxu1  ;;  %3941 = vmatprep.mubr.msk.f32.mxu0 %vm607_vm2, %v1915_v13  ;;  %3974 = vmatpush3.bf16.msra.mxu0 %v4481_v39  ;;  %v4164_v13 = vld [vmem:[%s4266_s24 + $0x10] sm:$0xff] }
 0x21f   : > { %3975 = vmatprep.subr.bf16.mxu0 %v4489_v42 }
 0x220   : > { %v1918_v15 = vpop.f32.mrf.mxu1 }
 0x221   : > { %3942 = vmatmul.mubr.msk.f32.gmra.mxu0 %vm607_vm2, %v1918_v15 }
 0x222   : > { %v3917_v16 = vpop.f32.mrf.mxu1  ;;  %3944 = vmatprep.mubr.msk.f32.mxu0 %vm607_vm2, %v3913_v12  ;;  %3976 = vmatpush3.bf16.msra.mxu0 %v4489_v42 }
 0x223   : > { %4007 = vmatprep.subr.mxu0 %v4758_v47 }
 0x224   : > { %v1931_v31 = vpop.f32.mrf.mxu1 }
 0x225   : > { %3945 = vmatmul.mubr.msk.f32.gmra.mxu0 %vm607_vm2, %v3914_v14  ;;  %v802_v14 = vadd.f32 %v4164_v13, %v4627_v23 }
 0x226   : > { %v3918_v18 = vpop.f32.mrf.mxu1  ;;  %3947 = vmatprep.mubr.msk.f32.mxu0 %vm607_vm2, %v1931_v31  ;;  %v4165_v31 = vld [vmem:[%s4266_s24 + $0x28] sm:$0xff] }
 0x228   : > { %v1934_v19 = vpop.f32.mrf.mxu1 }
 0x229   : > { %3948 = vmatmul.mubr.msk.f32.gmra.mxu0 %vm607_vm2, %v1934_v19 }
 0x22a   : > { %3950 = vmatprep.mubr.msk.f32.mxu0 %vm607_vm2, %v3917_v16  ;;  %v4844_v39 = vpop.f32.mrf.mxu1 }
 0x22c   : > { %v4849_v42 = vpop.f32.mrf.mxu1 }
 0x22d   : > { %3951 = vmatmul.mubr.msk.f32.gmra.mxu0 %vm607_vm2, %v3918_v18 }
 0x22e   : > { %v4855_v34 = vpop.f32.mrf.mxu1  ;;  %3977 = vmatprep.mubr.msk.bf16.mxu0 %vm864_vm3, %v4143_v21  ;;  %v804_v21 = vadd.f32 %v4166_v5, %v4634_v25  ;;  %v4170_v25 = vld [vmem:[%s4266_s24 + $0x40] sm:$0xff] }
 0x230   : > { %v4861_v36 = vpop.f32.mrf.mxu1 }
 0x231   : > { %3978 = vmatmul.mubr.msk.bf16.vlgmr.msra.gmra.mxu0 %vm864_vm3, %v4144_v22 }
 0x232   : > { %4008 = vmatpush3.msra.mxu0 %v4758_v47  ;;  %v4865_v37 = vpop.f32.mrf.mxu1  ;;  %3981 = vmatprep.mubr.msk.bf16.mxu0 %vm864_vm3, %v4145_v35  ;;  %v4167_v35 = vld [vmem:[%s4266_s24 + $0x38] sm:$0xff] }
 0x233   : > { %4009 = vmatprep.subr.mxu0 %v4768_v53 }
 0x234   : > { %v4869_v38 = vpop.f32.mrf.mxu1  ;;  %4010 = vmatpush3.msra.mxu0 %v4768_v53 }
 0x235   : > { %4011 = vmatprep.subr.mxu0 %v4776_v55 }
 0x236   : > { %v4876_v41 = vpop.f32.mrf.mxu1  ;;  %4012 = vmatpush3.msra.mxu0 %v4776_v55 }
 0x237   : > { %4013 = vmatprep.subr.mxu0 %v4783_v57 }
 0x238   : > { %v4883_v44 = vpop.f32.mrf.mxu1  ;;  %4014 = vmatpush3.msra.mxu0 %v4783_v57 }
 0x239   : > { %3982 = vmatmul.mubr.msk.bf16.gmra.mxu0 %vm864_vm3, %v4146_v40  ;;  %4015 = vmatprep.subr.mxu0 %v4792_v60  ;;  %v807_v40 = vadd.f32 %v4167_v35, %v4640_v20 }
 0x23a   : > { %v4888_v1 = vpop.f32.mrf.mxu1  ;;  %4016 = vmatpush3.msra.mxu0 %v4792_v60  ;;  %3985 = vmatprep.mubr.msk.bf16.mxu0 %vm864_vm3, %v4147_v43 }
 0x23b   : > { %4017 = vmatprep.subr.mxu0 %v4799_v62 }
 0x23c   : > { %v4893_v45 = vpop.f32.mrf.mxu1  ;;  %4018 = vmatpush3.msra.mxu0 %v4799_v62  ;;  %v4158_v62 = vld [vmem:[%s5079_s6 + $0x198] sm:$0xff]  }
 0x23d   : > { %4019 = vmatprep.subr.mxu0 %v4808_v2 }
 0x23e   : > { %v4900_v47 = vpop.f32.mrf.mxu1  ;;  %4020 = vmatpush3.msra.mxu0 %v4808_v2  ;;  %v4160_v2 = vld [vmem:[%s5079_s6 + $0x1a8] sm:$0xff]  }
 0x23f   : > { %5084 = vst [vmem:[#allocation2_spill] sm:$0xff] %v4900_v47  ;;  %4021 = vmatprep.subr.mxu0 %v4815_v4 }
 0x240   : > { %v4904_v48 = vpop.f32.mrf.mxu1  ;;  %4022 = vmatpush3.msra.mxu0 %v4815_v4  ;;  %v801_v4 = vadd.f32 %v4161_v3, %v4630_v17  ;;  %v805_v17 = vadd.f32 %v4165_v31, %v4636_v26 }
 0x241   : > { %5085 = vst [vmem:[#allocation3_spill] sm:$0xff] %v4904_v48  ;;  %3986 = vmatmul.mubr.msk.bf16.gmra.mxu0 %vm864_vm3, %v4148_v46  ;;  %4059 = vmatprep.subr.bf16.mxu0 %v4316_v33  ;;  %v4168_v46 = vld [vmem:[%s4266_s24 + $0x30] sm:$0xff] }
 0x242   : > { %v3997_v49 = vpop.f32.mrf.mxu1 }
 0x244   : > { %v2540_v50 = vpop.f32.mrf.mxu1 }
 0x245   : > { %4023 = vmatprep.mubr.msk.f32.mxu0 %vm607_vm2, %v2540_v50 }
 0x246   : > { %v3998_v51 = vpop.f32.mrf.mxu1 }
 0x248   : > { %v2543_v52 = vpop.f32.mrf.mxu1 }
 0x249   : > { %4024 = vmatmul.mubr.msk.f32.vlgmr.msra.gmra.mxu0 %vm607_vm2, %v2543_v52 }
 0x24a   : > { %4060 = vmatpush3.bf16.msra.mxu0 %v4316_v33  ;;  %v4001_v53 = vpop.f32.mrf.mxu1  ;;  %4026 = vmatprep.mubr.msk.f32.mxu0 %vm607_vm2, %v3997_v49  ;;  %v806_v49 = vadd.f32 %v4168_v46, %v4638_v27 }
 0x24b   : > { %4061 = vmatprep.subr.bf16.mxu0 %v4376_v58 }
 0x24c   : > { %v2556_v54 = vpop.f32.mrf.mxu1 }
 0x24d   : > { %4027 = vmatmul.mubr.msk.f32.gmra.mxu0 %vm607_vm2, %v3998_v51  ;;  %v4169_v51 = vld [vmem:[%s4266_s24 + $0x48] sm:$0xff] }
 0x24e   : > { %v4002_v55 = vpop.f32.mrf.mxu1  ;;  %4029 = vmatprep.mubr.msk.f32.mxu0 %vm607_vm2, %v2556_v54  ;;  %4062 = vmatpush3.bf16.msra.mxu0 %v4376_v58  ;;  %v4155_v58 = vld [vmem:[%s5079_s6 + $0x180] sm:$0xff]   ;;  %v809_v52 = vadd.f32 %v4169_v51, %v4644_v29 }
 0x24f   : > { %4063 = vmatprep.subr.bf16.mxu0 %v4384_v63 }
 0x250   : > { %v2559_v56 = vpop.f32.mrf.mxu1 }
 0x251   : > { %4030 = vmatmul.mubr.msk.f32.gmra.mxu0 %vm607_vm2, %v2559_v56 }
 0x252   : > { %v4005_v57 = vpop.f32.mrf.mxu1  ;;  %4032 = vmatprep.mubr.msk.f32.mxu0 %vm607_vm2, %v4001_v53  ;;  %4064 = vmatpush3.bf16.msra.mxu0 %v4384_v63  ;;  %v4156_v63 = vld [vmem:[%s5079_s6 + $0x188] sm:$0xff]  }
 0x254   : > { %v2572_v33 = vpop.f32.mrf.mxu1 }
 0x255   : > { %4033 = vmatmul.mubr.msk.f32.gmra.mxu0 %vm607_vm2, %v4002_v55  ;;  %v808_v55 = vadd.f32 %v4170_v25, %v4642_v28 }
 0x256   : > { %v4006_v59 = vpop.f32.mrf.mxu1  ;;  %4035 = vmatprep.mubr.msk.f32.mxu0 %vm607_vm2, %v2572_v33  ;;  %v4171_v33 = vld [vmem:[%s4266_s24 + $0x58] sm:$0xff] }
 0x257   : > { %v811_v20 = vadd.f32 %v4171_v33, %v4648_v32 }
 0x258   : > { %v2575_v60 = vpop.f32.mrf.mxu1 }
 0x259   : > { %4036 = vmatmul.mubr.msk.f32.gmra.mxu0 %vm607_vm2, %v2575_v60 }
 0x25a   : > { %4038 = vmatprep.mubr.msk.f32.mxu0 %vm607_vm2, %v4005_v57 }
 0x25d   : > { %4039 = vmatmul.mubr.msk.f32.gmra.mxu0 %vm607_vm2, %v4006_v59 }
 0x25e   : > { %4065 = vmatprep.mubr.msk.bf16.mxu0 %vm864_vm3, %v4155_v58  ;;  %v4172_v58 = vld [vmem:[%s4266_s24 + $0x50] sm:$0xff] }
 0x25f   : > { %v810_v27 = vadd.f32 %v4172_v58, %v4646_v30 }
 0x261   : > { %4066 = vmatmul.mubr.msk.bf16.vlgmr.msra.gmra.mxu0 %vm864_vm3, %v4156_v63 }
 0x262   : > { %4069 = vmatprep.mubr.msk.bf16.mxu0 %vm864_vm3, %v4157_v61 }
 0x269   : > { %4070 = vmatmul.mubr.msk.bf16.gmra.mxu0 %vm864_vm3, %v4158_v62 }
 0x26a   : > { %4073 = vmatprep.mubr.msk.bf16.mxu0 %vm864_vm3, %v4159_v0 }
 0x271   : > { %4074 = vmatmul.mubr.msk.bf16.gmra.mxu0 %vm864_vm3, %v4160_v2 }
 0x291   : > { %v3781_v8 = vpop.f32.mrf.mxu0 }
 0x292   : > { %v1134_v11 = vadd.f32 %v3781_v8, %v801_v4 }
 0x293   : > { %v1074_v12 = vpop.f32.mrf.mxu0 }
 0x294   : > { %v1133_v15 = vadd.f32 %v1074_v12, %v800_v7 }
 0x295   : > { %v3784_v16 = vpop.f32.mrf.mxu0 }
 0x296   : > { %v1136_v18 = vadd.f32 %v3784_v16, %v803_v10 }
 0x297   : > { %v1084_v19 = vpop.f32.mrf.mxu0 }
 0x298   : > { %v1135_v22 = vadd.f32 %v1084_v19, %v802_v14 }
 0x299   : > { %v3787_v24 = vpop.f32.mrf.mxu0 }
 0x29a   : > { %v1138_v43 = vadd.f32 %v3787_v24, %v805_v17 }
 0x29b   : > { %v1094_v23 = vpop.f32.mrf.mxu0 }
 0x29c   : > { %v1137_v50 = vadd.f32 %v1094_v23, %v804_v21 }
 0x29d   : > { %v3790_v26 = vpop.f32.mrf.mxu0 }
 0x29e   : > { %v1140_v53 = vadd.f32 %v3790_v26, %v807_v40 }
 0x29f   : > { %v1104_v54 = vpop.f32.mrf.mxu0 }
 0x2a0   : > { %v1139_v56 = vadd.f32 %v1104_v54, %v806_v49 }
 0x2a1   : > { %v3793_v57 = vpop.f32.mrf.mxu0 }
 0x2a2   : > { %v1142_v59 = vadd.f32 %v3793_v57, %v809_v52 }
 0x2a3   : > { %v1114_v60 = vpop.f32.mrf.mxu0 }
 0x2a4   : > { %v1141_v63 = vadd.f32 %v1114_v60, %v808_v55 }
 0x2a5   : > { %v3796_v61 = vpop.f32.mrf.mxu0 }
 0x2a6   : > { %v1144_v62 = vadd.f32 %v3796_v61, %v811_v20 }
 0x2a7   : > { %v1124_v0 = vpop.f32.mrf.mxu0 }
 0x2a8   : > { %v1143_v29 = vadd.f32 %v1124_v0, %v810_v27 }
 0x2a9   : > { %v3833_v2 = vpop.f32.mrf.mxu0 }
 0x2aa   : > { %v1468_v3 = vadd.f32 %v3833_v2, %v1134_v11 }
 0x2ab   : > { %v1408_v4 = vpop.f32.mrf.mxu0 }
 0x2ac   : > { %v1467_v6 = vadd.f32 %v1408_v4, %v1133_v15 }
 0x2ad   : > { %v3836_v28 = vpop.f32.mrf.mxu0 }
 0x2ae   : > { %v1470_v7 = vadd.f32 %v3836_v28, %v1136_v18 }
 0x2af   : > { %v1418_v8 = vpop.f32.mrf.mxu0 }
 0x2b0   : > { %v1469_v9 = vadd.f32 %v1418_v8, %v1135_v22 }
 0x2b1   : > { %v3839_v10 = vpop.f32.mrf.mxu0 }
 0x2b2   : > { %v1472_v32 = vadd.f32 %v3839_v10, %v1138_v43 }
 0x2b3   : > { %v1428_v12 = vpop.f32.mrf.mxu0 }
 0x2b4   : > { %v1471_v13 = vadd.f32 %v1428_v12, %v1137_v50 }
 0x2b5   : > { %v3842_v14 = vpop.f32.mrf.mxu0 }
 0x2b6   : > { %v1474_v16 = vadd.f32 %v3842_v14, %v1140_v53 }
 0x2b7   : > { %v1438_v30 = vpop.f32.mrf.mxu0 }
 0x2b8   : > { %v1473_v31 = vadd.f32 %v1438_v30, %v1139_v56 }
 0x2b9   : > { %v3845_v17 = vpop.f32.mrf.mxu0 }
 0x2ba   : > { %v1476_v19 = vadd.f32 %v3845_v17, %v1142_v59 }
 0x2bb   : > { %v1448_v5 = vpop.f32.mrf.mxu0 }
 0x2bc   : > { %v1475_v21 = vadd.f32 %v1448_v5, %v1141_v63 }
 0x2bd   : > { %v3848_v24 = vpop.f32.mrf.mxu0 }
 0x2be   : > { %v1478_v11 = vadd.f32 %v3848_v24, %v1144_v62 }
 0x2bf   : > { %v1458_v35 = vpop.f32.mrf.mxu0 }
 0x2c0   : > { %v1477_v15 = vadd.f32 %v1458_v35, %v1143_v29  ;;  %v4049_v35 = vpop.f32.mrf.mxu1 }
 0x2c1   : > { %v3885_v40 = vpop.f32.mrf.mxu0 }
 0x2c2   : > { %v1783_v18 = vadd.f32 %v3885_v40, %v1468_v3 }
 0x2c3   : > { %v1723_v23 = vpop.f32.mrf.mxu0 }
 0x2c4   : > { %v1782_v22 = vadd.f32 %v1723_v23, %v1467_v6 }
 0x2c5   : > { %v3888_v46 = vpop.f32.mrf.mxu0 }
 0x2c6   : > { %v1785_v43 = vadd.f32 %v3888_v46, %v1470_v7 }
 0x2c7   : > { %v1733_v49 = vpop.f32.mrf.mxu0 }
 0x2c8   : > { %v1784_v50 = vadd.f32 %v1733_v49, %v1469_v9 }
 0x2c9   : > { %v3891_v26 = vpop.f32.mrf.mxu0 }
 0x2ca   : > { %v1787_v51 = vadd.f32 %v3891_v26, %v1472_v32 }
 0x2cb   : > { %v1743_v52 = vpop.f32.mrf.mxu0 }
 0x2cc   : > { %v4974_v53 = vadd.f32 %v1743_v52, %v1471_v13 }
 0x2cd   : > { %v3894_v54 = vpop.f32.mrf.mxu0 }
 0x2ce   : > { %v4976_v25 = vadd.f32 %v3894_v54, %v1474_v16 }
 0x2cf   : > { %v1753_v55 = vpop.f32.mrf.mxu0 }
 0x2d0   : > { %v1788_v56 = vadd.f32 %v1753_v55, %v1473_v31 }
 0x2d1   : > { %v3897_v57 = vpop.f32.mrf.mxu0 }
 0x2d2   : > { %v1791_v33 = vadd.f32 %v3897_v57, %v1476_v19 }
 0x2d3   : > { %v1763_v20 = vpop.f32.mrf.mxu0 }
 0x2d4   : > { %v4978_v59 = vadd.f32 %v1763_v20, %v1475_v21 }
 0x2d5   : > { %v3900_v60 = vpop.f32.mrf.mxu0 }
 0x2d6   : > { %v4980_v58 = vadd.f32 %v3900_v60, %v1478_v11 }
 0x2d7   : > { %v1773_v27 = vpop.f32.mrf.mxu0 }
 0x2d8   : > { %v4982_v63 = vadd.f32 %v1773_v27, %v1477_v15 }
 0x2d9   : > { %v3937_v61 = vpop.f32.mrf.mxu0 }
 0x2da   : > { %v2117_v62 = vadd.f32 %v3937_v61, %v1783_v18  ;;  %v2855_v18 = vpop.f32.mrf.mxu1 }
 0x2db   : > { %v2057_v0 = vpop.f32.mrf.mxu0 }
 0x2dc   : > { %v4050_v49 = vpop.f32.mrf.mxu1 }
 0x2dd   : > { %v3940_v29 = vpop.f32.mrf.mxu0 }
 0x2de   : > { %v2858_v52 = vpop.f32.mrf.mxu1  ;;  %v2119_v27 = vadd.f32 %v3940_v29, %v1785_v43 }
 0x2df   : > { %v2067_v2 = vpop.f32.mrf.mxu0 }
 0x2e0   : > { %v2118_v55 = vadd.f32 %v2067_v2, %v1784_v50  ;;  %v4053_v20 = vpop.f32.mrf.mxu1 }
 0x2e1   : > { %v3943_v3 = vpop.f32.mrf.mxu0 }
 0x2e2   : > { %v4984_v4 = vadd.f32 %v3943_v3, %v1787_v51  ;;  %v2281_v61 = vadd.f32 %v4844_v39, %v2118_v55  ;;  %v2871_v48 = vpop.f32.mrf.mxu1  ;;  %v2280_v39 = vadd.f32 %v4861_v36, %v2117_v62 }
 0x2e3   : > { %v2077_v6 = vpop.f32.mrf.mxu0 }
 0x2e5   : > { %v3946_v28 = vpop.f32.mrf.mxu0 }
 0x2e6   : > { %v2123_v2 = vadd.f32 %v3946_v28, %v4976_v25 }
 0x2e7   : > { %v2087_v7 = vpop.f32.mrf.mxu0 }
 0x2e8   : > { %v2286_v25 = vadd.f32 %v4876_v41, %v2123_v2  ;;  %v2284_v41 = vadd.f32 %v4883_v44, %v4984_v4 }
 0x2e9   : > { %v3949_v8 = vpop.f32.mrf.mxu0 }
 0x2ea   : > { %v4986_v9 = vadd.f32 %v3949_v8, %v1791_v33  ;;  %v2116_v33 = vadd.f32 %v2057_v0, %v1782_v22  ;;  %v2120_v22 = vadd.f32 %v2077_v6, %v4974_v53 }
 0x2eb   : > { %v4988_v10 = vpop.f32.mrf.mxu0 }
 0x2ec   : > { %5086 = vst [vmem:[#allocation4_spill] sm:$0xff] %v4986_v9 }
 0x2ed   : > { %v4990_v32 = vpop.f32.mrf.mxu0 }
 0x2ef   : > { %v2107_v12 = vpop.f32.mrf.mxu0 }
 0x2f0   : > { %v2126_v36 = vadd.f32 %v2107_v12, %v4982_v63 }
 0x2f1   : > { %v3979_v13 = vpop.f32.mrf.mxu0 }
 0x2f2   : > { %v2435_v8 = vadd.f32 %v3979_v13, %v2281_v61  ;;  %v4054_v13 = vpop.f32.mrf.mxu1 }
 0x2f3   : > { %v2386_v14 = vpop.f32.mrf.mxu0 }
 0x2f4   : > { %v2874_v62 = vpop.f32.mrf.mxu1 }
 0x2f5   : > { %v3980_v16 = vpop.f32.mrf.mxu0 }
 0x2f7   : > { %v2389_v30 = vpop.f32.mrf.mxu0 }
 0x2f8   : > { %v2434_v55 = vadd.f32 %v2389_v30, %v2280_v39  ;;  %v5093_v39 = vld [vmem:[#allocation4_spill] sm:$0xff] }
 0x2f9   : > { %v3983_v31 = vpop.f32.mrf.mxu0 }
 0x2fb   : > { %v2402_v17 = vpop.f32.mrf.mxu0 }
 0x2fd   : > { %v3984_v19 = vpop.f32.mrf.mxu0 }
 0x2fe   : > { %v2440_v63 = vadd.f32 %v3984_v19, %v2286_v25 }
 0x2ff   : > { %v4992_v5 = vpop.f32.mrf.mxu0 }
 0x301   : > { %v4994_v21 = vpop.f32.mrf.mxu0 }
 0x303   : > { %v4996_v24 = vpop.f32.mrf.mxu0 }
 0x304   : > { %5087 = vst [vmem:[#allocation5_spill] sm:$0xff] %v4996_v24  ;;  %v2282_v24 = vadd.f32 %v4855_v34, %v2119_v27  ;;  %v2283_v34 = vadd.f32 %v4869_v38, %v2120_v22  ;;  %v5091_v27 = vld [vmem:[#allocation2_spill] sm:$0xff] }
 0x305   : > { %v4998_v11 = vpop.f32.mrf.mxu0 }
 0x306   : > { %5088 = vst [vmem:[#allocation6_spill] sm:$0xff] %v4998_v11  ;;  %v2122_v11 = vadd.f32 %v2087_v7, %v1788_v56  ;;  %v2436_v43 = vadd.f32 %v3980_v16, %v2282_v24  ;;  %v2124_v24 = vadd.f32 %v4988_v10, %v4978_v59  ;;  %v4057_v59 = vpop.f32.mrf.mxu1 }
 0x307   : > { %v5000_v15 = vpop.f32.mrf.mxu0 }
 0x308   : > { %5089 = vst [vmem:[#allocation7_spill] sm:$0xff] %v5000_v15  ;;  %v2279_v15 = vadd.f32 %v4849_v42, %v2116_v33  ;;  %v2285_v56 = vadd.f32 %v4865_v37, %v2122_v11 }
 0x309   : > { %v4025_v40 = vpop.f32.mrf.mxu0 }
 0x30a   : > { %v2433_v47 = vadd.f32 %v2386_v14, %v2279_v15  ;;  %v2439_v53 = vadd.f32 %v3983_v31, %v2285_v56  ;;  %v2749_v6 = vadd.f32 %v4025_v40, %v2434_v55 }
 0x30b   : > { %v2689_v23 = vpop.f32.mrf.mxu0 }
 0x30c   : > { %v2748_v29 = vadd.f32 %v2689_v23, %v2433_v47  ;;  %v2437_v47 = vadd.f32 %v2402_v17, %v2283_v34  ;;  %v2903_v17 = vadd.f32 %v2858_v52, %v2749_v6  ;;  %v2438_v23 = vadd.f32 %v4992_v5, %v2284_v41 }
 0x30d   : > { %v4028_v46 = vpop.f32.mrf.mxu0 }
 0x30e   : > { %v2751_v7 = vadd.f32 %v4028_v46, %v2436_v43  ;;  %v2902_v16 = vadd.f32 %v2855_v18, %v2748_v29  ;;  %v2127_v18 = vadd.f32 %v4990_v32, %v4980_v58  ;;  %v2289_v46 = vadd.f32 %v4888_v1, %v2126_v36  ;;  %v5094_v29 = vld [vmem:[#allocation3_spill] sm:$0xff] }
 0x30f   : > { %v2699_v26 = vpop.f32.mrf.mxu0  ;;  %v2288_v2 = vadd.f32 %v5094_v29, %v5093_v39 }
 0x310   : > { %v2750_v50 = vadd.f32 %v2699_v26, %v2435_v8  ;;  %v2905_v31 = vadd.f32 %v4050_v49, %v2751_v7  ;;  %v2443_v52 = vadd.f32 %v4994_v21, %v2289_v46  ;;  %v2290_v61 = vadd.f32 %v5091_v27, %v2127_v18  ;;  %v2887_v8 = vpop.f32.mrf.mxu1 }
 0x311   : > { %v5002_v51 = vpop.f32.mrf.mxu0 }
 0x312   : > { %v2904_v14 = vadd.f32 %v4049_v35, %v2750_v50  ;;  %v2753_v58 = vadd.f32 %v5002_v51, %v2438_v23  ;;  %v5092_v51 = vld [vmem:[#allocation6_spill] sm:$0xff] }
 0x313   : > { %v2709_v54 = vpop.f32.mrf.mxu0  ;;  %v2444_v43 = vadd.f32 %v5092_v51, %v2290_v61 }
 0x314   : > { %v2752_v11 = vadd.f32 %v2709_v54, %v2437_v47  ;;  %v2287_v54 = vadd.f32 %v4893_v45, %v2124_v24 }
 0x315   : > { %v4034_v57 = vpop.f32.mrf.mxu0 }
 0x316   : > { %v2755_v19 = vadd.f32 %v4034_v57, %v2440_v63  ;;  %v2906_v5 = vadd.f32 %v2871_v48, %v2752_v11  ;;  %v5090_v57 = vld [vmem:[#allocation5_spill] sm:$0xff]  ;;  %v2907_v48 = vadd.f32 %v2874_v62, %v2753_v58 }
 0x317   : > { %v2719_v60 = vpop.f32.mrf.mxu0 }
 0x318   : > { %v2754_v28 = vadd.f32 %v2719_v60, %v2439_v53  ;;  %v2441_v60 = vadd.f32 %v5090_v57, %v2287_v54  ;;  %v2909_v22 = vadd.f32 %v4054_v13, %v2755_v19 }
 0x319   : > { %v5005_v3 = vpop.f32.mrf.mxu0 }
 0x31a   : > { %v2908_v49 = vadd.f32 %v4053_v20, %v2754_v28 }
 0x31b   : > { %v5008_v9 = vpop.f32.mrf.mxu0 }
 0x31c   : > { %v2756_v56 = vadd.f32 %v5008_v9, %v2441_v60 }
 0x31d   : > { %v5012_v0 = vpop.f32.mrf.mxu0 }
 0x31e   : > { %v2759_v13 = vadd.f32 %v5012_v0, %v2444_v43  ;;  %v2910_v62 = vadd.f32 %v2887_v8, %v2756_v56 }
 0x31f   : > { %v2739_v42 = vpop.f32.mrf.mxu0 }
 0x320   : > { %v2758_v20 = vadd.f32 %v2739_v42, %v2443_v52 }
 0x321   : > { %v4067_v15 = vpop.f32.mrf.mxu0 }
 0x322   : > { %v3058_v26 = vadd.f32 %v4067_v15, %v2904_v14  ;;  %v5095_v14 = vld [vmem:[#allocation7_spill] sm:$0xff]  ;;  %v4058_v15 = vpop.f32.mrf.mxu1 }
 0x323   : > { %v3009_v37 = vpop.f32.mrf.mxu0  ;;  %v2442_v34 = vadd.f32 %v5095_v14, %v2288_v2 }
 0x324   : > { %v3070_v38 = vmax.f32 %v3058_v26, 0.0  ;;  %v3056_v30 = vadd.f32 %v3009_v37, %v2902_v16  ;;  %v2912_v16 = vadd.f32 %v4057_v59, %v2758_v20  ;;  %v2890_v37 = vpop.f32.mrf.mxu1 }
 0x325   : > { %v4068_v12 = vpop.f32.mrf.mxu0  ;;  %v2757_v9 = vadd.f32 %v5005_v3, %v2442_v34 }
 0x326   : > { %3082 = vst.msk [vmem:[%s5024_s29 + $0x10] sm:$0xff] %vm607_vm2, %v3070_v38  ;;  %v3068_v35 = vmax.f32 %v3056_v30, 0.0  ;;  %v3059_v40 = vadd.f32 %v4068_v12, %v2905_v31  ;;  %v2913_v30 = vadd.f32 %v4058_v15, %v2759_v13 }
 0x327   : > { %v3012_v10 = vpop.f32.mrf.mxu0  ;;  %v2911_v24 = vadd.f32 %v2890_v37, %v2757_v9 }
 0x328   : > { %3080 = vst.msk [vmem:[%s5024_s29] sm:$0xff] %vm607_vm2, %v3068_v35  ;;  %v3071_v44 = vmax.f32 %v3059_v40, 0.0  ;;  %v3057_v4 = vadd.f32 %v3012_v10, %v2903_v17 }
 0x329   : > { %v4071_v33 = vpop.f32.mrf.mxu0 }
 0x32a   : > { %3083 = vst.msk [vmem:[%s5024_s29 + $0x18] sm:$0xff] %vm607_vm2, %v3071_v44  ;;  %v3069_v32 = vmax.f32 %v3057_v4, 0.0  ;;  %v3062_v1 = vadd.f32 %v4071_v33, %v2908_v49 }
 0x32b   : > { %v3025_v50 = vpop.f32.mrf.mxu0 }
 0x32c   : > { %3081 = vst.msk [vmem:[%s5024_s29 + $0x8] sm:$0xff] %vm607_vm2, %v3069_v32  ;;  %v3074_v45 = vmax.f32 %v3062_v1, 0.0  ;;  %v3060_v21 = vadd.f32 %v3025_v50, %v2906_v5 }
 0x32d   : > { %v4072_v55 = vpop.f32.mrf.mxu0 }
 0x32e   : > { %3086 = vst.msk [vmem:[%s5024_s29 + $0x30] sm:$0xff] %vm607_vm2, %v3074_v45  ;;  %v3072_v7 = vmax.f32 %v3060_v21, 0.0  ;;  %v3063_v42 = vadd.f32 %v4072_v55, %v2909_v22 }
 0x32f   : > { %v3028_v53 = vpop.f32.mrf.mxu0 }
 0x330   : > { %3084 = vst.msk [vmem:[%s5024_s29 + $0x20] sm:$0xff] %vm607_vm2, %v3072_v7  ;;  %v3075_v6 = vmax.f32 %v3063_v42, 0.0  ;;  %v3061_v26 = vadd.f32 %v3028_v53, %v2907_v48 }
 0x331   : > { %v4075_v36 = vpop.f32.mrf.mxu0 }
 0x332   : > { %3087 = vst.msk [vmem:[%s5024_s29 + $0x38] sm:$0xff] %vm607_vm2, %v3075_v6  ;;  %v3073_v47 = vmax.f32 %v3061_v26, 0.0  ;;  %v3066_v25 = vadd.f32 %v4075_v36, %v2912_v16 }
 0x333   : > { %v3041_v28 = vpop.f32.mrf.mxu0 }
 0x334   : > { %3085 = vst.msk [vmem:[%s5024_s29 + $0x28] sm:$0xff] %vm607_vm2, %v3073_v47  ;;  %v3078_v0 = vmax.f32 %v3066_v25, 0.0  ;;  %v3064_v38 = vadd.f32 %v3041_v28, %v2910_v62 }
 0x335   : > { %v4076_v31 = vpop.f32.mrf.mxu0 }
 0x336   : > { %3090 = vst.msk [vmem:[%s5024_s29 + $0x50] sm:$0xff] %vm607_vm2, %v3078_v0  ;;  %v3076_v3 = vmax.f32 %v3064_v38, 0.0  ;;  %v3067_v63 = vadd.f32 %v4076_v31, %v2913_v30 }
 0x337   : > { %v3044_v41 = vpop.f32.mrf.mxu0 }
 0x338   : > { %3088 = vst.msk [vmem:[%s5024_s29 + $0x40] sm:$0xff] %vm607_vm2, %v3076_v3  ;;  %v3079_v12 = vmax.f32 %v3067_v63, 0.0  ;;  %v3065_v17 = vadd.f32 %v3044_v41, %v2911_v24 }
 0x33a   : > { %3091 = vst.msk [vmem:[%s5024_s29 + $0x58] sm:$0xff] %vm607_vm2, %v3079_v12  ;;  %v3077_v11 = vmax.f32 %v3065_v17, 0.0 }
 0x33c   : > { %3089 = vst.msk [vmem:[%s5024_s29 + $0x48] sm:$0xff] %vm607_vm2, %v3077_v11 }
 0x33d PF: > { %s21_s13 = sadd.s32 1, %s4179_s13  }
 0x33e   : > { %p18_p4 = scmp.ge.s32.totalorder %s21_s13, 4  }
 0x340   :  { %20 = sbr.rel (!%p18_p4) target bundleno = 1 (0x1), region = 117 }

</bundles_post_ra>
